<compile_context>
chip_gen: v5e
topology: v5e:2x2
jax: 0.10.0
libtpu: 0.0.40
codegen_flags: <defaults>
</compile_context>

<pallas_src>
import math

import jax
import jax.numpy as jnp
from jax.experimental import pallas as pl
from jax.experimental.pallas import tpu as pltpu


_LANE = 128      # lane width: last block dim must be a multiple of this
_SUBLANE = 8     # sublane width: second-to-last block dim multiple
_TN_CAP = 256    # cap on batch tile (rows of the MXU matmul)
_TM_CAP = 1024   # cap on output-column tile
_TK_CAP = 2048   # cap on contraction tile
_G2_TILE_BUDGET_BYTES = 8 * 1024 * 1024   # double-buffered bf16 G2 tile budget
_VMEM_LIMIT_BYTES = 32 * 1024 * 1024      # safe on v5e/v6e (128 MiB) and v7x (64 MiB/TC)


def _round_up(v, m):
    return (v + m - 1) // m * m


def _pick_mk_tiles(K, M):
    """Lane-dense, VMEM-aware tile sizes (multiples of 128) for (K, M)."""
    mp_unit = _round_up(M, _LANE)
    tm = min(mp_unit, _TM_CAP)
    # Keep >= 2 output tiles when possible so the "parallel" axis can be split
    # across the 2 TensorCores on v7x.
    if mp_unit >= 2 * _LANE:
        tm = min(tm, max(_LANE, (mp_unit // 2) // _LANE * _LANE))
    tm = max(_LANE, tm // _LANE * _LANE)

    kp_unit = _round_up(K, _LANE)
    # Double-buffered bf16 G2 tile (2 * tk * tm * 2 bytes) under budget.
    tk_cap = max(_LANE, (_G2_TILE_BUDGET_BYTES // (4 * tm)) // _LANE * _LANE)
    tk = min(kp_unit, tk_cap, _TK_CAP)
    tk = max(_LANE, tk // _LANE * _LANE)
    return tm, tk


# ----------------------------------------------------------------------------
# Pallas kernel: batch/output/contraction-tiled matmul.  The f32 output tile
# is the accumulator; the bias is its k==0 initializer.
#   x_ref: (tn, tk)  bf16 batch slab
#   g_ref: (tk, tm)  bf16 tile of the (scaled) circulant filter matrix
#   b_ref: (1, tm)   f32 pre-broadcast bias tile
#   o_ref: (tn, tm)  f32 output tile (revisited across the k axis)
# Grid: (NP//tn [parallel], MP//tm [parallel], KP//tk [arbitrary/reduction]).
# ----------------------------------------------------------------------------
def _deconv_matmul_kernel(x_ref, g_ref, b_ref, o_ref):
    k = pl.program_id(2)

    @pl.when(k == 0)
    def _():
        o_ref[...] = jnp.broadcast_to(b_ref[...], o_ref.shape)

    o_ref[...] += jnp.dot(x_ref[...], g_ref[...],
                          preferred_element_type=jnp.float32)


def _deconv_matmul(x_flat, g2, b_flat, *, tn, tm, tk):
    """(NP, KP) bf16 @ (KP, MP) bf16 + (1, MP) f32 bias -> (NP, MP) f32."""
    NP, KP = x_flat.shape
    _, MP = g2.shape
    grid = (NP // tn, MP // tm, KP // tk)

    cost = pl.CostEstimate(
        flops=2 * NP * KP * MP,
        transcendentals=0,
        bytes_accessed=int(x_flat.size * x_flat.dtype.itemsize
                           + (NP // tn) * g2.size * g2.dtype.itemsize
                           + b_flat.size * 4
                           + NP * MP * 4),
    )

    return pl.pallas_call(
        _deconv_matmul_kernel,
        out_shape=jax.ShapeDtypeStruct((NP, MP), jnp.float32),
        grid_spec=pltpu.PrefetchScalarGridSpec(
            num_scalar_prefetch=0,
            grid=grid,
            in_specs=[
                pl.BlockSpec((tn, tk), lambda n, j, k: (n, k)),
                pl.BlockSpec((tk, tm), lambda n, j, k: (k, j)),
                pl.BlockSpec((1, tm), lambda n, j, k: (0, j)),
            ],
            out_specs=pl.BlockSpec((tn, tm), lambda n, j, k: (n, j)),
        ),
        compiler_params=pltpu.CompilerParams(
            dimension_semantics=("parallel", "parallel", "arbitrary"),
            vmem_limit_bytes=_VMEM_LIMIT_BYTES,
        ),
        cost_estimate=cost,
    )(x_flat, g2, b_flat)


class Deconv2D:
    """JAX / Pallas re-implementation of the PyTorch Deconv2D module."""

    def __init__(self, in_channels=1, out_channels=1, kernel_size=(2, 4),
                 bias=True, first_elem_trainable=False, four_factor=True,
                 pad_inner=None, key=None):
        if key is None:
            key = jax.random.PRNGKey(0)
        kw_key, b_key, attn_key = jax.random.split(key, 3)

        init_factor = kernel_size[0] * kernel_size[1] * (in_channels + out_channels)
        if first_elem_trainable:
            w = jax.random.normal(
                kw_key, (out_channels, in_channels) + kernel_size, jnp.float32)
            w = w / init_factor
            w = w.at[:, :, 0, 0].set(1.0)
        else:
            w = jax.random.normal(
                kw_key,
                (out_channels, in_channels, kernel_size[0] * kernel_size[1] - 1),
                jnp.float32)
            w = w / init_factor

        self.in_channels = in_channels
        self.out_channels = out_channels
        self.kernel_size = kernel_size
        self.w = w
        self.first_elem_trainable = first_elem_trainable
        self.four_factor = four_factor
        self.pad_inner = pad_inner
        # Present in the PyTorch module but unused in its forward pass.
        self.w_chan_attn = jax.random.normal(attn_key, (in_channels, 1, 1), jnp.float32)
        if bias:
            self.b = jax.random.uniform(b_key, (1, out_channels, 1, 1), jnp.float32) - 0.5
        else:
            self.b = jnp.zeros((1, out_channels, 1, 1), jnp.float32)

        # Per-(H, W) cache of the (padded, bf16, pre-scaled) circulant matrix,
        # bias slab and tiling parameters.  Weights are frozen after init in
        # this script; for training, invalidate this cache on weight updates.
        self._cache = {}

    # -------------------- parameter-side (plain JAX) setup --------------------
    def _full_weight(self):
        w = self.w
        if not self.first_elem_trainable:
            # F.pad(w, (1, 0), value=1) then reshape to (Cout, Cin, kh, kw)
            w = jnp.pad(w, ((0, 0), (0, 0), (1, 0)), constant_values=1.0)
            w = w.reshape((self.out_channels, self.in_channels) + self.kernel_size)
        return w

    def _spatial_filter(self, H, W):
        """Exact spatial (real) filter whose circular convolution equals
        multiplying by gmf in the DFT domain."""
        w = self._full_weight()
        kh, kw = w.shape[-2], w.shape[-1]
        hm1 = jnp.pad(w, ((0, 0), (0, 0), (0, H - kh), (0, W - kw)))
        gm1f = 1.0 / jnp.fft.fft2(hm1)
        if self.four_factor:
            gm2f = jnp.roll(jnp.flip(gm1f, axis=-2), 1, axis=-2)
            gm3f = jnp.roll(jnp.flip(gm1f, axis=-1), 1, axis=-1)
            gm4f = jnp.roll(jnp.flip(gm1f, axis=(-2, -1)), (1, 1), axis=(-2, -1))
            gmf = gm1f * gm2f * gm3f * gm4f
        else:
            gmf = gm1f
        # real(ifft2(gmf * fft2(x))) == circ_conv(real(ifft2(gmf)), x) for real x.
        return jnp.real(jnp.fft.ifft2(gmf)).astype(jnp.float32)  # (Cout, Cin, H, W)

    def _circulant_matrix(self, g, H, W):
        """G2[(c,i',j'), (o,i,j)] = g[o, c, (i-i')%H, (j-j')%W]."""
        ii = jnp.arange(H)
        jj = jnp.arange(W)
        di = (ii[None, :] - ii[:, None]) % H          # [i', i]
        dj = (jj[None, :] - jj[:, None]) % W          # [j', j]
        # Gbig[o, c, i', j', i, j]
        Gbig = g[:, :, di[:, None, :, None], dj[None, :, None, :]]
        G2 = jnp.transpose(Gbig, (1, 2, 3, 0, 4, 5)).reshape(
            self.in_channels * H * W, self.out_channels * H * W)
        return G2

    def _get_operands(self, H, W):
        """Cached (padded bf16 G2 with 1/sqrt(Cin) folded in, f32 bias, tiles)."""
        key = (H, W)
        if key not in self._cache:
            Cin, Cout = self.in_channels, self.out_channels
            K = Cin * H * W
            M = Cout * H * W
            tm, tk = _pick_mk_tiles(K, M)
            KP = _round_up(K, tk)
            MP = _round_up(M, tm)

            g = self._spatial_filter(H, W)
            G2 = self._circulant_matrix(g, H, W)                    # (K, M) f32
            G2 = G2 * jnp.float32(1.0 / math.sqrt(Cin))             # fold scale
            G2 = G2.astype(jnp.bfloat16)
            if KP != K or MP != M:
                G2 = jnp.pad(G2, ((0, KP - K), (0, MP - M)))

            b_flat = jnp.broadcast_to(
                self.b.reshape(Cout, 1, 1), (Cout, H, W)).reshape(1, M)
            b_flat = b_flat.astype(jnp.float32)
            if MP != M:
                b_flat = jnp.pad(b_flat, ((0, 0), (0, MP - M)))

            G2 = jax.block_until_ready(G2)
            b_flat = jax.block_until_ready(b_flat)
            self._cache[key] = (G2, b_flat, tm, tk, KP, MP)
        return self._cache[key]

    # ------------------------------- forward ----------------------------------
    def __call__(self, x):
        N, Cin, H0, W0 = x.shape
        assert Cin == self.in_channels

        ph = pw = 0
        if self.pad_inner:
            ph = int(self.pad_inner * H0)
            pw = int(self.pad_inner * W0)
            if ph > 0 or pw > 0:
                x = jnp.pad(x, ((0, 0), (0, 0), (ph, ph), (pw, pw)))
        H, W = x.shape[-2], x.shape[-1]
        Cout = self.out_channels

        K = Cin * H * W
        M = Cout * H * W
        G2, b_flat, tm, tk, KP, MP = self._get_operands(H, W)

        NP8 = _round_up(N, _SUBLANE)
        tn = min(NP8, _TN_CAP)
        NP = _round_up(NP8, tn)

        x_flat = x.reshape(N, K).astype(jnp.bfloat16)
        if NP != N or KP != K:
            x_flat = jnp.pad(x_flat, ((0, NP - N), (0, KP - K)))

        y_flat = _deconv_matmul(x_flat, G2, b_flat, tn=tn, tm=tm, tk=tk)

        y = y_flat[:N, :M].reshape(N, Cout, H, W)
        if ph > 0 or pw > 0:
            # Slice back to the original spatial extent (guards ph/pw == 0).
            y = y[:, :, ph:ph + H0, pw:pw + W0]
        return y


# ------------------- pure-JAX reference (mirrors PyTorch forward) -------------
def reference_forward(module, x):
    xx = x[:, None]                                   # (N, 1, Cin, H, W)
    w = module._full_weight()
    H, W = x.shape[-2], x.shape[-1]
    hm1 = jnp.pad(w, ((0, 0), (0, 0), (0, H - w.shape[-2]), (0, W - w.shape[-1])))
    gm1f = 1.0 / jnp.fft.fft2(hm1)
    if module.four_factor:
        gm2f = jnp.roll(jnp.flip(gm1f, axis=-2), 1, axis=-2)
        gm3f = jnp.roll(jnp.flip(gm1f, axis=-1), 1, axis=-1)
        gm4f = jnp.roll(jnp.flip(gm1f, axis=(-2, -1)), (1, 1), axis=(-2, -1))
        gmf = gm1f * gm2f * gm3f * gm4f
    else:
        gmf = gm1f
    ymf = gmf * jnp.fft.fft2(xx)
    y = jnp.real(jnp.fft.ifft2(ymf))
    y = jnp.sum(y, axis=-3) / (module.in_channels ** 0.5) + module.b
    return y.astype(jnp.float32)


if __name__ == "__main__":
    key = jax.random.PRNGKey(0)
    k_x, k_params = jax.random.split(key)

    N, Cin, Cout, H, W = 2, 4, 4, 16, 16
    x = jax.random.normal(k_x, (N, Cin, H, W), jnp.float32)

    module = Deconv2D(in_channels=Cin, out_channels=Cout, kernel_size=(2, 4),
                      bias=True, first_elem_trainable=False, four_factor=True,
                      pad_inner=None, key=k_params)

    y = module(x)
    y = jax.block_until_ready(y)
    assert y.shape == (N, Cout, H, W), y.shape

    # Second call exercises the G2 cache (no filter rebuild).
    y2 = jax.block_until_ready(module(x))

    y_ref = reference_forward(module, x)
    max_err = float(jnp.max(jnp.abs(y - y_ref)))
    # bf16 operand streaming (f32 accumulation) over a K=1024 contraction.
    assert max_err < 5e-2, f"mismatch vs FFT reference: max abs err {max_err}"
    max_err2 = float(jnp.max(jnp.abs(y2 - y)))
    assert max_err2 == 0.0, f"cached-call mismatch: {max_err2}"

    print("KERNEL_OK")
</pallas_src>

<mosaic_0001>
module attributes {stable_mosaic.version = 11 : i64} {
  func.func @_deconv_matmul_kernel(%arg0: i32, %arg1: i32, %arg2: i32, %arg3: memref<8x1024xbf16, #tpu.memory_space<vmem>>, %arg4: memref<1024x512xbf16, #tpu.memory_space<vmem>>, %arg5: memref<1x512xf32, #tpu.memory_space<vmem>>, %arg6: memref<8x512xf32, #tpu.memory_space<vmem>>) attributes {dimension_semantics = [#tpu.dimension_semantics<parallel>, #tpu.dimension_semantics<parallel>, #tpu.dimension_semantics<arbitrary>], iteration_bounds = array<i64: 1, 2, 1>, scalar_prefetch = 0 : i64, scratch_operands = 0 : i64, tpu.core_type = #tpu.core_type<tc>, window_params = [{transform_indices = @transform_0, window_bounds = array<i64: 8, 1024>}, {transform_indices = @transform_1, window_bounds = array<i64: 1024, 512>}, {transform_indices = @transform_2, window_bounds = array<i64: 1, 512>}, {transform_indices = @transform_3, window_bounds = array<i64: 8, 512>}]} {
    %c0_i32 = arith.constant 0 : i32
    %0 = arith.cmpi eq, %arg2, %c0_i32 : i32
    %1 = arith.extui %0 : i1 to i32
    %c0_i32_0 = arith.constant 0 : i32
    %2 = arith.cmpi ne, %1, %c0_i32_0 : i32
    scf.if %2 {
      %c0_8 = arith.constant 0 : index
      %c0_9 = arith.constant 0 : index
      %9 = vector.load %arg5[%c0_8, %c0_9] : memref<1x512xf32, #tpu.memory_space<vmem>>, vector<1x512xf32>
      %10 = vector.shape_cast %9 : vector<1x512xf32> to vector<1x512xf32>
      %11 = vector.broadcast %10 : vector<1x512xf32> to vector<8x512xf32>
      %c0_10 = arith.constant 0 : index
      %c0_11 = arith.constant 0 : index
      %12 = vector.load %arg6[%c0_10, %c0_11] : memref<8x512xf32, #tpu.memory_space<vmem>>, vector<8x512xf32>
      tpu.vector_store %arg6[%c0_10, %c0_11], %11 {strides = array<i32>} : memref<8x512xf32, #tpu.memory_space<vmem>>, vector<8x512xf32>,
    } else {
    }
    %c0 = arith.constant 0 : index
    %c0_1 = arith.constant 0 : index
    %3 = vector.load %arg6[%c0, %c0_1] : memref<8x512xf32, #tpu.memory_space<vmem>>, vector<8x512xf32>
    %c0_2 = arith.constant 0 : index
    %c0_3 = arith.constant 0 : index
    %4 = vector.load %arg3[%c0_2, %c0_3] : memref<8x1024xbf16, #tpu.memory_space<vmem>>, vector<8x1024xbf16>
    %c0_4 = arith.constant 0 : index
    %c0_5 = arith.constant 0 : index
    %5 = vector.load %arg4[%c0_4, %c0_5] : memref<1024x512xbf16, #tpu.memory_space<vmem>>, vector<1024x512xbf16>
    %cst = arith.constant dense<0.000000e+00> : vector<8x512xf32>
    %6 = tpu.matmul %4, %5, %cst {dimension_numbers = #tpu.dot_dimension_numbers<[1], [0], [0], [1], [0, 0, 1, 1], [], []>} : vector<8x1024xbf16>, vector<1024x512xbf16>, vector<8x512xf32> -> vector<8x512xf32>
    %7 = arith.addf %3, %6 : vector<8x512xf32>
    %c0_6 = arith.constant 0 : index
    %c0_7 = arith.constant 0 : index
    %8 = vector.load %arg6[%c0_6, %c0_7] : memref<8x512xf32, #tpu.memory_space<vmem>>, vector<8x512xf32>
    tpu.vector_store %arg6[%c0_6, %c0_7], %7 {strides = array<i32>} : memref<8x512xf32, #tpu.memory_space<vmem>>, vector<8x512xf32>,
    return
  }
  func.func @transform_0(%arg0: i32, %arg1: i32, %arg2: i32) -> (i32, i32) {
    %c0_i32 = arith.constant 0 : i32
    return %arg0, %arg2 : i32, i32
  }
  func.func @transform_1(%arg0: i32, %arg1: i32, %arg2: i32) -> (i32, i32) {
    %c0_i32 = arith.constant 0 : i32
    return %arg2, %arg1 : i32, i32
  }
  func.func @transform_2(%arg0: i32, %arg1: i32, %arg2: i32) -> (i32, i32) {
    %c0_i32 = arith.constant 0 : i32
    %c0_i32_0 = arith.constant 0 : i32
    return %c0_i32, %arg1 : i32, i32
  }
  func.func @transform_3(%arg0: i32, %arg1: i32, %arg2: i32) -> (i32, i32) {
    %c0_i32 = arith.constant 0 : i32
    return %arg0, %arg1 : i32, i32
  }
}

</mosaic_0001>

<bundles_post_ra>
// kernel: tpu_custom_call.1
= control target key start
LH: loop header
LB: loop body
LE: loop exit
PB: predicated region body
PF: predicated region fallthrough
CT: control target
= control target key end

     0   :  { %8 = vsyncpa [#allocation3], 0  ;;  %s4792_s0 = inlined_call_operand.hbm [shape: bf16[8,1024], index: 0, kind: input, shape index: {}]   ;;  %s4793_s1 = inlined_call_operand.hbm [shape: bf16[1024,1024], index: 1, kind: input, shape index: {}]   ;;  %s4794_s2 = inlined_call_operand.hbm [shape: f32[1,1024], index: 2, kind: input, shape index: {}]   ;;  %s4795_s3 = inlined_call_operand.hbm [shape: f32[8,1024], index: 3, kind: output, shape index: {}]  }
   0x1   :  { %9 = vsyncpa [#allocation6], 0 }
   0x2   :  { %11 = vsyncpa [#allocation6 + $0x1], 0 }
   0x3   :  { %12 = vsyncpa [#allocation4], 0 }
   0x4   :  { %14 = vsyncpa [#allocation4 + $0x1], 0  ;;  %s4027_s12 = smov 0   ;;  %s4029_s13 = smov 0  }
   0x5   :  { %s4031_s14 = smov 0   ;;  %s4033_s15 = smov 0  }
   0x6   :  { %s4035_s16 = smov 0   ;;  %s4037_s17 = smov 0  }
   0x7 LB: > { %s35_s18 = sadd.s32 1, %s3997_s16  ;;  %s76_s19 = sadd.s32 1, %s3989_s14  ;;  %s4001_s17 = sphi %s4037_s17, %s20_s17   ;;  %s3997_s16 = sphi %s4035_s16, %s4806_s16   ;;  %s3993_s15 = sphi %s4033_s15, %s4805_s15   ;;  %s3989_s14 = sphi %s4031_s14, %s4804_s14   ;;  %s3985_s13 = sphi %s4029_s13, %s4803_s13   ;;  %s3981_s12 = sphi %s4027_s12, %s4802_s12  }
   0x8   : > { %p37_p0 = scmp.ge.s32.totalorder %s35_s18, 2  ;;  %p83_p1 = scmp.ne.s32.totalorder %s3989_s14, %s3985_s13 }
   0x9   : > { %p84_p2 = scmp.eq.s32.totalorder %s4001_s17, 0  ;;  %p2446_p3 = scmp.ge.s32.totalorder %s4001_s17, 2 }
   0xa   : > { %s4808_s18 = smov (%p37_p0, %s35_s18), 0  ;;  %p3770_p5 = scmp.lt.s32.totalorder %s4001_s17, 2 }
   0xb   : > { %p4068_p4 = por %p84_p2, %p83_p1  ;;  %s72_s21 = ssub.s32 %s3997_s16, %s4808_s18 }
   0xc   : > { %s184_s22 = sand.u32 1, %s4001_s17   ;;  %p74_p6 = scmp.eq.s32.totalorder %s72_s21, 0 }
   0xd   : > { %s186_s23 = sand.u32 1, %s3989_s14   ;;  %s3486_s24 = sshll.u32 %s3997_s16, 4 }
   0xe   : > { %s4079_s25 = scalar_select %p74_p6, %s3989_s14, %s76_s19  }
   0xf   : > { %s2447_s26 = sshll.u32 %s186_s23, 11  ;;  %s196_s29 = scalar_lea.hbm %s4793_s1, %s3486_s24 }
  0x10   : > { %s197_s30 = sshll.u32 %s196_s29, 4  ;;  %s188_s4 = scalar_lea.vmem [#allocation5], %s2447_s26  ;;  %s198_s30 = int_to_ptr.hbm [resolvable:$true] %s197_s30 }
  0x11   : > { %s199_s5 = sshll.u32 %s188_s4, 4  ;;  %p4090_p7 = pnand %p3770_p5, %p4068_p4  ;;  %s200_s5 = int_to_ptr.vmem [resolvable:$true] %s199_s5 }
  0x12   : > { %s4094_s7 = scalar_lea.sflag [#allocation6], %s184_s22  ;;  %s4003_s8 = smov 512  }
  0x13   : > { %s4004_s9 = smov 256   ;;  %s4005_s10 = smov 16  }
  0x14   : > { %3761 = dma.hbm_to_vmem [thread:$0]  (!%p4090_p7), %s198_s30, 32768, %s200_s5, %s4094_s7, %s4003_s8, %s4004_s9, %s4005_s10  }
  0x15   : > { %s4100_s11 = sadd.s32 4294967295, %s4001_s17   ;;  %s2443_s19 = sadd.s32 4294967294, %s4001_s17  }
  0x16   : > { %p89_p8 = scmp.ne.s32.totalorder %s3985_s13, %s3981_s12  ;;  %p90_p9 = scmp.eq.s32.totalorder %s4100_s11, 0 }
  0x17   : > { %p141_p10 = scmp.eq.s32.totalorder %s4100_s11, 1  ;;  %p147_p11 = scmp.eq.s32.totalorder %s2443_s19, 1 }
  0x18   : > { %p4109_p12 = por %p90_p9, %p89_p8  ;;  %p2444_p13 = scmp.ge.s32.totalorder %s4001_s17, 1 }
  0x19   : > { %p4117_p0 = por %p141_p10, %p83_p1  ;;  %p4121_p2 = por %p147_p11, %p89_p8 }
  0x1a   : > { %p154_p4 = scmp.lt.s32.totalorder %s4001_s17, 3  ;;  %s171_s27 = sshll.u32 %s4792_s0, 4  ;;  %s172_s27 = int_to_ptr.hbm [resolvable:$true] %s171_s27 }
  0x1b   : > { %s4006_s29 = smov [#allocation2]   ;;  %s2450_s4 = sshll.u32 %s186_s23, 2 }
  0x1c   : > { %p4129_p5 = pnand %p2444_p13, %p154_p4  ;;  %s173_s30 = sshll.u32 %s4006_s29, 4  ;;  %s174_s30 = int_to_ptr.vmem [resolvable:$true] %s173_s30 }
  0x1d   : > { %s2451_s5 = sshll.u32 %s3997_s16, 2  ;;  %s213_s24 = scalar_lea.vmem [#allocation7], %s2450_s4 }
  0x1e   : > { %p3754_p1 = pneg %p4129_p5  ;;  %s217_s10 = scalar_lea.hbm %s4794_s2, %s2451_s5 }
  0x1f   : > { %s219_s19 = sshll.u32 %s217_s10, 4  ;;  %s221_s26 = sshll.u32 %s213_s24, 4  ;;  %s220_s19 = int_to_ptr.hbm [resolvable:$true] %s219_s19  ;;  %s222_s26 = int_to_ptr.vmem [resolvable:$true] %s221_s26 }
  0x20   : > { %p3755_p6 = pnand %p3754_p1, %p90_p9  ;;  %230 = sbr.rel (%p4129_p5) target bundleno = 445 (0x1bd), region = 32 }
  0x21   : > { %3764 = dma.hbm_to_vmem [thread:$0]  (!%p4090_p7), %s220_s19, 64, %s222_s26, %s4094_s7  }
  0x22   : > { %3757 = dma.hbm_to_vmem [thread:$0]  (!%p3755_p6), %s172_s27, 512, %s174_s30, [#allocation3]  }
  0x25   : > { %3968 = dma.done.wait (%p90_p9), [#allocation3], 512  }
  0x26   : > { %3970 = vsyncadd (%p90_p9), [#allocation3], 4294966784  ;;  %s237_s23 = sand.u32 1, %s4100_s11   ;;  %s4154_s29 = sand.u32 1, %s3985_s13  }
  0x27   : > { %s2454_s27 = sshll.u32 %s4154_s29, 11  ;;  %s238_s30 = scalar_lea.sflag [#allocation6], %s237_s23 }
  0x28   : > { %s4157_s6 = scalar_lea.vmem [#allocation5], %s2454_s27 }
  0x29   : > { %3972 = dma.done.wait (%p4109_p12), %s238_s30, 32832  }
  0x2a   : > { %3974 = vsyncadd (%p4109_p12), %s238_s30, 4294934464  ;;  %v2571_v0 = vld [vmem:[%s4157_s6 + $0xe0] sm:$0xf]  ;;  %v3517_v1 = vld [vmem:[%s4157_s6 + $0xec] sm:$0xf0]  ;;  %s2455_s7 = sshll.u32 %s4154_s29, 2 }
  0x2b   : > { %v2699_v2 = vld [vmem:[%s4157_s6 + $0x1e0] sm:$0xf]  ;;  %v2572_v3 = vor.u32 %v3517_v1, %v2571_v0  ;;  %v3549_v4 = vld [vmem:[%s4157_s6 + $0x1ec] sm:$0xf0]  ;;  %s251_s11 = scalar_lea.vmem [#allocation7], %s2455_s7  ;;  %s2456_s20 = sshll.u32 %s4154_s29, 5 }
  0x2c   : > { %v2827_v5 = vld [vmem:[%s4157_s6 + $0x2e0] sm:$0xf]  ;;  %v3581_v6 = vld [vmem:[%s4157_s6 + $0x2ec] sm:$0xf0]  ;;  %v2700_v7 = vor.u32 %v3549_v4, %v2699_v2  ;;  %s4658_s28 = scalar_lea.vmem [#allocation8], %s2456_s20  ;;  %s3743_s4 = sshll.u32 %s3993_s15, 5 }
  0x2d   : > { %v2828_v8 = vor.u32 %v3581_v6, %v2827_v5  ;;  %v2955_v9 = vld [vmem:[%s4157_s6 + $0x3e0] sm:$0xf]  ;;  %v3613_v10 = vld [vmem:[%s4157_s6 + $0x3ec] sm:$0xf0]  ;;  %1875 = vmatpush.bf16.msra.mxu0 %v2572_v3  ;;  %s2313_s9 = scalar_lea.hbm %s4795_s3, %s3743_s4  ;;  %s2315_s10 = sshll.u32 %s4658_s28, 4  ;;  %s2316_s10 = int_to_ptr.vmem [resolvable:$true] %s2315_s10 }
  0x2e   : > { %v2555_v11 = vld [vmem:[%s4157_s6 + $0xc0] sm:$0xf]  ;;  %v2956_v12 = vor.u32 %v3613_v10, %v2955_v9  ;;  %v3513_v13 = vld [vmem:[%s4157_s6 + $0xcc] sm:$0xf0]  ;;  %1888 = vmatpush.bf16.msra.mxu1 %v2700_v7  ;;  %s2317_s19 = sshll.u32 %s2313_s9, 4  ;;  %s2300_s15 = scalar_lea.sflag [#allocation4], %s4154_s29  ;;  %s2318_s19 = int_to_ptr.hbm [resolvable:$true] %s2317_s19 }
  0x2f   : > { %v2683_v14 = vld [vmem:[%s4157_s6 + $0x1c0] sm:$0xf]  ;;  %v3545_v15 = vld [vmem:[%s4157_s6 + $0x1cc] sm:$0xf0]  ;;  %1901 = vmatpush.bf16.msra.mxu2 %v2828_v8  ;;  %v2556_v16 = vor.u32 %v3513_v13, %v2555_v11  ;;  %s3929_s24 = sshra.s32 %s2318_s19, 4  ;;  %s3935_s30 = scalar_lea.hbm %s4795_s3, 64  ;;  %s3930_s24 = int_to_ptr.hbm [resolvable:$true] %s3929_s24 }
  0x30   : > { %v2684_v17 = vor.u32 %v3545_v15, %v2683_v14  ;;  %v2811_v18 = vld [vmem:[%s4157_s6 + $0x2c0] sm:$0xf]  ;;  %v3577_v19 = vld [vmem:[%s4157_s6 + $0x2cc] sm:$0xf0]  ;;  %1914 = vmatpush.bf16.msra.mxu3 %v2956_v12  ;;  %s3931_s26 = scalar_lea.hbm %s3930_s24, 32  ;;  %p3936_p10 = scmp.lt.s32.totalorder %s3930_s24, %s4795_s3 }
  0x31   : > { %v2939_v20 = vld [vmem:[%s4157_s6 + $0x3c0] sm:$0xf]  ;;  %v2812_v21 = vor.u32 %v3577_v19, %v2811_v18  ;;  %v3609_v22 = vld [vmem:[%s4157_s6 + $0x3cc] sm:$0xf0]  ;;  %1876 = vmatpush.bf16.msra.mxu0 %v2556_v16  ;;  %p3932_p7 = scmp.ne.s32.totalorder %s3930_s24, %s3931_s26  ;;  %p3937_p11 = scmp.lt.s32.totalorder %s3935_s30, %s3931_s26 }
  0x32   : > { %v2539_v23 = vld [vmem:[%s4157_s6 + $0xa0] sm:$0xf]  ;;  %v3509_v24 = vld [vmem:[%s4157_s6 + $0xac] sm:$0xf0]  ;;  %v2940_v25 = vor.u32 %v3609_v22, %v2939_v20  ;;  %1889 = vmatpush.bf16.msra.mxu1 %v2684_v17 }
  0x33   : > { %v2667_v26 = vld [vmem:[%s4157_s6 + $0x1a0] sm:$0xf]  ;;  %v3541_v27 = vld [vmem:[%s4157_s6 + $0x1ac] sm:$0xf0]  ;;  %v2540_v29 = vor.u32 %v3509_v24, %v2539_v23  ;;  %1902 = vmatpush.bf16.msra.mxu2 %v2812_v21  ;;  %p3933_p8 = pnand %p3932_p7, %p4117_p0  ;;  %p3938_p12 = por %p3937_p11, %p3936_p10 }
  0x34   : > { %v2795_v28 = vld [vmem:[%s4157_s6 + $0x2a0] sm:$0xf]  ;;  %v3573_v30 = vld [vmem:[%s4157_s6 + $0x2ac] sm:$0xf0]  ;;  %v2668_v33 = vor.u32 %v3541_v27, %v2667_v26  ;;  %1915 = vmatpush.bf16.msra.mxu3 %v2940_v25 }
  0x35   : > { %v2923_v31 = vld [vmem:[%s4157_s6 + $0x3a0] sm:$0xf]  ;;  %v3605_v32 = vld [vmem:[%s4157_s6 + $0x3ac] sm:$0xf0]  ;;  %v2796_v34 = vor.u32 %v3573_v30, %v2795_v28  ;;  %1877 = vmatpush.bf16.msra.mxu0 %v2540_v29  ;;  %p3934_p9 = pneg %p3933_p8 }
  0x36   : > { %v2523_v35 = vld [vmem:[%s4157_s6 + $0x80] sm:$0xf]  ;;  %v3505_v36 = vld [vmem:[%s4157_s6 + $0x8c] sm:$0xf0]  ;;  %v2924_v38 = vor.u32 %v3605_v32, %v2923_v31  ;;  %1890 = vmatpush.bf16.msra.mxu1 %v2668_v33 }
  0x37   : > { %v2651_v37 = vld [vmem:[%s4157_s6 + $0x180] sm:$0xf]  ;;  %v3537_v39 = vld [vmem:[%s4157_s6 + $0x18c] sm:$0xf0]  ;;  %v2524_v44 = vor.u32 %v3505_v36, %v2523_v35  ;;  %1903 = vmatpush.bf16.msra.mxu2 %v2796_v34  ;;  %p3939_p13 = pnand %p3938_p12, %p3934_p9 }
  0x38   : > { %v2779_v40 = vld [vmem:[%s4157_s6 + $0x280] sm:$0xf]  ;;  %v3569_v41 = vld [vmem:[%s4157_s6 + $0x28c] sm:$0xf0]  ;;  %v2652_v45 = vor.u32 %v3537_v39, %v2651_v37  ;;  %1916 = vmatpush.bf16.msra.mxu3 %v2924_v38 }
  0x39   : > { %v2907_v42 = vld [vmem:[%s4157_s6 + $0x380] sm:$0xf]  ;;  %v3601_v43 = vld [vmem:[%s4157_s6 + $0x38c] sm:$0xf0]  ;;  %v2780_v46 = vor.u32 %v3569_v41, %v2779_v40  ;;  %1878 = vmatpush.bf16.msra.mxu0 %v2524_v44 }
  0x3a   : > { %v2507_v47 = vld [vmem:[%s4157_s6 + $0x60] sm:$0xf]  ;;  %v3501_v48 = vld [vmem:[%s4157_s6 + $0x6c] sm:$0xf0]  ;;  %v2908_v50 = vor.u32 %v3601_v43, %v2907_v42  ;;  %1891 = vmatpush.bf16.msra.mxu1 %v2652_v45 }
  0x3b   : > { %v2635_v49 = vld [vmem:[%s4157_s6 + $0x160] sm:$0xf]  ;;  %v3533_v51 = vld [vmem:[%s4157_s6 + $0x16c] sm:$0xf0]  ;;  %v2508_v56 = vor.u32 %v3501_v48, %v2507_v47  ;;  %1904 = vmatpush.bf16.msra.mxu2 %v2780_v46 }
  0x3c   : > { %v2763_v52 = vld [vmem:[%s4157_s6 + $0x260] sm:$0xf]  ;;  %v3565_v53 = vld [vmem:[%s4157_s6 + $0x26c] sm:$0xf0]  ;;  %v2636_v57 = vor.u32 %v3533_v51, %v2635_v49  ;;  %1917 = vmatpush.bf16.msra.mxu3 %v2908_v50 }
  0x3d   : > { %v2891_v54 = vld [vmem:[%s4157_s6 + $0x360] sm:$0xf]  ;;  %v3597_v55 = vld [vmem:[%s4157_s6 + $0x36c] sm:$0xf0]  ;;  %v2764_v58 = vor.u32 %v3565_v53, %v2763_v52  ;;  %1879 = vmatpush.bf16.msra.mxu0 %v2508_v56 }
  0x3e   : > { %v2491_v59 = vld [vmem:[%s4157_s6 + $0x40] sm:$0xf]  ;;  %v3497_v60 = vld [vmem:[%s4157_s6 + $0x4c] sm:$0xf0]  ;;  %v2892_v62 = vor.u32 %v3597_v55, %v2891_v54  ;;  %1892 = vmatpush.bf16.msra.mxu1 %v2636_v57 }
  0x3f   : > { %v2619_v61 = vld [vmem:[%s4157_s6 + $0x140] sm:$0xf]  ;;  %v3529_v63 = vld [vmem:[%s4157_s6 + $0x14c] sm:$0xf0]  ;;  %v2492_v4 = vor.u32 %v3497_v60, %v2491_v59  ;;  %1905 = vmatpush.bf16.msra.mxu2 %v2764_v58  ;;  %v308_v58 = vld [vmem:[#allocation2 + $0x8] sm:$0xff] }
  0x40   : > { %v2747_v0 = vld [vmem:[%s4157_s6 + $0x240] sm:$0xf]  ;;  %v3561_v1 = vld [vmem:[%s4157_s6 + $0x24c] sm:$0xf0]  ;;  %v2620_v5 = vor.u32 %v3529_v63, %v2619_v61  ;;  %1918 = vmatpush.bf16.msra.mxu3 %v2892_v62  ;;  %v573_v63 = vunpack.c.l.b16 %v308_v58 }
  0x41   : > { %v2875_v2 = vld [vmem:[%s4157_s6 + $0x340] sm:$0xf]  ;;  %v3593_v3 = vld [vmem:[%s4157_s6 + $0x34c] sm:$0xf0]  ;;  %v2748_v6 = vor.u32 %v3561_v1, %v2747_v0  ;;  %1880 = vmatpush.bf16.msra.mxu0 %v2492_v4  ;;  %v574_v0 = vunpack.c.h.b16 %v308_v58 }
  0x42   : > { %v2475_v7 = vld [vmem:[%s4157_s6 + $0x20] sm:$0xf]  ;;  %v3493_v8 = vld [vmem:[%s4157_s6 + $0x2c] sm:$0xf0]  ;;  %v2876_v10 = vor.u32 %v3593_v3, %v2875_v2  ;;  %1893 = vmatpush.bf16.msra.mxu1 %v2620_v5  ;;  %v4251_v4 = vpack.c.b16 %v573_v63, %v573_v63 }
  0x43   : > { %v2603_v9 = vld [vmem:[%s4157_s6 + $0x120] sm:$0xf]  ;;  %v3525_v11 = vld [vmem:[%s4157_s6 + $0x12c] sm:$0xf0]  ;;  %v2476_v16 = vor.u32 %v3493_v8, %v2475_v7  ;;  %1906 = vmatpush.bf16.msra.mxu2 %v2748_v6  ;;  %v4253_v6 = vpack.c.b16 %v574_v0, %v574_v0 }
  0x44   : > { %v2731_v12 = vld [vmem:[%s4157_s6 + $0x220] sm:$0xf]  ;;  %v3557_v13 = vld [vmem:[%s4157_s6 + $0x22c] sm:$0xf0]  ;;  %v2604_v19 = vor.u32 %v3525_v11, %v2603_v9  ;;  %1919 = vmatpush.bf16.msra.mxu3 %v2876_v10 }
  0x45   : > { %v2859_v14 = vld [vmem:[%s4157_s6 + $0x320] sm:$0xf]  ;;  %v3589_v15 = vld [vmem:[%s4157_s6 + $0x32c] sm:$0xf0]  ;;  %v2732_v20 = vor.u32 %v3557_v13, %v2731_v12  ;;  %1881 = vmatpush.bf16.msra.mxu0 %v2476_v16 }
  0x46   : > { %v2459_v17 = vld [vmem:[%s4157_s6] sm:$0xf]  ;;  %v3489_v18 = vld [vmem:[%s4157_s6 + $0xc] sm:$0xf0]  ;;  %v2860_v24 = vor.u32 %v3589_v15, %v2859_v14  ;;  %1894 = vmatpush.bf16.msra.mxu1 %v2604_v19 }
  0x47   : > { %v2587_v21 = vld [vmem:[%s4157_s6 + $0x100] sm:$0xf]  ;;  %v3521_v22 = vld [vmem:[%s4157_s6 + $0x10c] sm:$0xf0]  ;;  %v2460_v31 = vor.u32 %v3489_v18, %v2459_v17  ;;  %1907 = vmatpush.bf16.msra.mxu2 %v2732_v20 }
  0x48   : > { %v2715_v23 = vld [vmem:[%s4157_s6 + $0x200] sm:$0xf]  ;;  %v3553_v25 = vld [vmem:[%s4157_s6 + $0x20c] sm:$0xf0]  ;;  %v2588_v35 = vor.u32 %v3521_v22, %v2587_v21  ;;  %1920 = vmatpush.bf16.msra.mxu3 %v2860_v24 }
  0x49   : > { %v2843_v26 = vld [vmem:[%s4157_s6 + $0x300] sm:$0xf]  ;;  %v3585_v27 = vld [vmem:[%s4157_s6 + $0x30c] sm:$0xf0]  ;;  %v2716_v36 = vor.u32 %v3553_v25, %v2715_v23  ;;  %1882 = vmatpush.bf16.msra.mxu0 %v2460_v31 }
  0x4a   : > { %v3083_v28 = vld [vmem:[%s4157_s6 + $0x4e0] sm:$0xf]  ;;  %v3645_v29 = vld [vmem:[%s4157_s6 + $0x4ec] sm:$0xf0]  ;;  %v2844_v39 = vor.u32 %v3585_v27, %v2843_v26  ;;  %1895 = vmatpush.bf16.msra.mxu1 %v2588_v35 }
  0x4b   : > { %v3211_v30 = vld [vmem:[%s4157_s6 + $0x5e0] sm:$0xf]  ;;  %v3677_v32 = vld [vmem:[%s4157_s6 + $0x5ec] sm:$0xf0]  ;;  %v3084_v40 = vor.u32 %v3645_v29, %v3083_v28  ;;  %1908 = vmatpush.bf16.msra.mxu2 %v2716_v36 }
  0x4c   : > { %v3339_v33 = vld [vmem:[%s4157_s6 + $0x6e0] sm:$0xf]  ;;  %v3709_v34 = vld [vmem:[%s4157_s6 + $0x6ec] sm:$0xf0]  ;;  %v3212_v41 = vor.u32 %v3677_v32, %v3211_v30  ;;  %1921 = vmatpush.bf16.msra.mxu3 %v2844_v39 }
  0x4d   : > { %v3467_v37 = vld [vmem:[%s4157_s6 + $0x7e0] sm:$0xf]  ;;  %v3741_v38 = vld [vmem:[%s4157_s6 + $0x7ec] sm:$0xf0]  ;;  %v3340_v42 = vor.u32 %v3709_v34, %v3339_v33  ;;  %1927 = vmatpush.bf16.msrb.mxu0 %v3084_v40 }
  0x4e   : > { %v3067_v43 = vld [vmem:[%s4157_s6 + $0x4c0] sm:$0xf]  ;;  %v3641_v44 = vld [vmem:[%s4157_s6 + $0x4cc] sm:$0xf0]  ;;  %v3468_v46 = vor.u32 %v3741_v38, %v3467_v37  ;;  %1940 = vmatpush.bf16.msrb.mxu1 %v3212_v41  ;;  %1909 = vmatmul.bf16.vlgmr.msra.gmra.mxu2 %v4251_v4 }
  0x4f   : > { %v3195_v45 = vld [vmem:[%s4157_s6 + $0x5c0] sm:$0xf]  ;;  %v3673_v47 = vld [vmem:[%s4157_s6 + $0x5cc] sm:$0xf0]  ;;  %v3068_v52 = vor.u32 %v3641_v44, %v3067_v43  ;;  %1953 = vmatpush.bf16.msrb.mxu2 %v3340_v42  ;;  %1922 = vmatmul.bf16.vlgmr.msra.gmra.mxu3 %v4253_v6 }
  0x50   : > { %v3323_v48 = vld [vmem:[%s4157_s6 + $0x6c0] sm:$0xf]  ;;  %v3705_v49 = vld [vmem:[%s4157_s6 + $0x6cc] sm:$0xf0]  ;;  %v3196_v54 = vor.u32 %v3673_v47, %v3195_v45  ;;  %1966 = vmatpush.bf16.msrb.mxu3 %v3468_v46 }
  0x51   : > { %v3451_v50 = vld [vmem:[%s4157_s6 + $0x7c0] sm:$0xf]  ;;  %v3737_v51 = vld [vmem:[%s4157_s6 + $0x7cc] sm:$0xf0]  ;;  %v3324_v55 = vor.u32 %v3705_v49, %v3323_v48  ;;  %1928 = vmatpush.bf16.msrb.mxu0 %v3068_v52 }
  0x52   : > { %v3051_v53 = vld [vmem:[%s4157_s6 + $0x4a0] sm:$0xf]  ;;  %v3637_v56 = vld [vmem:[%s4157_s6 + $0x4ac] sm:$0xf0]  ;;  %v3452_v59 = vor.u32 %v3737_v51, %v3451_v50  ;;  %1941 = vmatpush.bf16.msrb.mxu1 %v3196_v54 }
  0x53   : > { %v3179_v57 = vld [vmem:[%s4157_s6 + $0x5a0] sm:$0xf]  ;;  %v3669_v60 = vld [vmem:[%s4157_s6 + $0x5ac] sm:$0xf0]  ;;  %v3052_v3 = vor.u32 %v3637_v56, %v3051_v53  ;;  %1954 = vmatpush.bf16.msrb.mxu2 %v3324_v55 }
  0x54   : > { %v3307_v61 = vld [vmem:[%s4157_s6 + $0x6a0] sm:$0xf]  ;;  %v3701_v62 = vld [vmem:[%s4157_s6 + $0x6ac] sm:$0xf0]  ;;  %v3180_v7 = vor.u32 %v3669_v60, %v3179_v57  ;;  %1967 = vmatpush.bf16.msrb.mxu3 %v3452_v59 }
  0x55   : > { %v3435_v1 = vld [vmem:[%s4157_s6 + $0x7a0] sm:$0xf]  ;;  %v3733_v2 = vld [vmem:[%s4157_s6 + $0x7ac] sm:$0xf0]  ;;  %v3308_v8 = vor.u32 %v3701_v62, %v3307_v61  ;;  %1929 = vmatpush.bf16.msrb.mxu0 %v3052_v3  ;;  %v310_v3 = vld [vmem:[#allocation2 + $0x18] sm:$0xff] }
  0x56   : > { %v307_v5 = vld [vmem:[#allocation2] sm:$0xff]  ;;  %v3633_v10 = vld [vmem:[%s4157_s6 + $0x48c] sm:$0xf0]  ;;  %v3436_v14 = vor.u32 %v3733_v2, %v3435_v1  ;;  %1942 = vmatpush.bf16.msrb.mxu1 %v3180_v7 }
  0x57   : > { %v3035_v9 = vld [vmem:[%s4157_s6 + $0x480] sm:$0xf]  ;;  %v571_v12 = vunpack.c.l.b16 %v307_v5  ;;  %v572_v13 = vunpack.c.h.b16 %v307_v5  ;;  %v3665_v15 = vld [vmem:[%s4157_s6 + $0x58c] sm:$0xf0]  ;;  %1955 = vmatpush.bf16.msrb.mxu2 %v3308_v8 }
  0x58   : > { %v3163_v11 = vld [vmem:[%s4157_s6 + $0x580] sm:$0xf]  ;;  %v3697_v17 = vld [vmem:[%s4157_s6 + $0x68c] sm:$0xf0]  ;;  %v3036_v22 = vor.u32 %v3633_v10, %v3035_v9  ;;  %1968 = vmatpush.bf16.msrb.mxu3 %v3436_v14  ;;  %v3515_v10 = vld [vmem:[%s4157_s6 + $0xe4] sm:$0xf] }
  0x59   : > { %v3291_v16 = vld [vmem:[%s4157_s6 + $0x680] sm:$0xf]  ;;  %v3729_v19 = vld [vmem:[%s4157_s6 + $0x78c] sm:$0xf0]  ;;  %v4264_v20 = vpack.c.b16 %v571_v12, %v571_v12  ;;  %v4267_v21 = vpack.c.b16 %v572_v13, %v572_v13  ;;  %v3164_v23 = vor.u32 %v3665_v15, %v3163_v11  ;;  %v2573_v11 = vld [vmem:[%s4157_s6 + $0xf0] sm:$0xf0] }
  0x5a   : > { %v3419_v18 = vld [vmem:[%s4157_s6 + $0x780] sm:$0xf]  ;;  %v3292_v24 = vor.u32 %v3697_v17, %v3291_v16  ;;  %v3629_v26 = vld [vmem:[%s4157_s6 + $0x46c] sm:$0xf0]  ;;  %1930 = vmatpush.bf16.msrb.mxu0 %v3036_v22  ;;  %v3547_v12 = vld [vmem:[%s4157_s6 + $0x1e4] sm:$0xf]  ;;  %v577_v17 = vunpack.c.l.b16 %v310_v3 }
  0x5b   : > { %v3019_v25 = vld [vmem:[%s4157_s6 + $0x460] sm:$0xf]  ;;  %v3420_v28 = vor.u32 %v3729_v19, %v3419_v18  ;;  %v3661_v29 = vld [vmem:[%s4157_s6 + $0x56c] sm:$0xf0]  ;;  %1883 = vmatmul.bf16.vlgmr.msra.gmra.mxu0 %v4264_v20  ;;  %1896 = vmatmul.bf16.vlgmr.msra.gmra.mxu1 %v4267_v21  ;;  %v2701_v14 = vld [vmem:[%s4157_s6 + $0x1f0] sm:$0xf0] }
  0x5c   : > { %v3147_v27 = vld [vmem:[%s4157_s6 + $0x560] sm:$0xf]  ;;  %v3693_v31 = vld [vmem:[%s4157_s6 + $0x66c] sm:$0xf0]  ;;  %v3020_v34 = vor.u32 %v3629_v26, %v3019_v25  ;;  %1943 = vmatpush.bf16.msrb.mxu1 %v3164_v23  ;;  %1956 = vmatpush.bf16.msrb.mxu2 %v3292_v24  ;;  %v3579_v15 = vld [vmem:[%s4157_s6 + $0x2e4] sm:$0xf]  ;;  %v578_v25 = vunpack.c.h.b16 %v310_v3 }
  0x5d   : > { %v3275_v30 = vld [vmem:[%s4157_s6 + $0x660] sm:$0xf]  ;;  %v3725_v33 = vld [vmem:[%s4157_s6 + $0x76c] sm:$0xf0]  ;;  %v3148_v35 = vor.u32 %v3661_v29, %v3147_v27  ;;  %1969 = vmatpush.bf16.msrb.mxu3 %v3420_v28  ;;  %v2829_v16 = vld [vmem:[%s4157_s6 + $0x2f0] sm:$0xf0]  ;;  %v2576_v27 = vor.u32 %v3515_v10, %v2573_v11  ;;  %v2704_v29 = vor.u32 %v3547_v12, %v2701_v14 }
  0x5e   : > { %v3403_v32 = vld [vmem:[%s4157_s6 + $0x760] sm:$0xf]  ;;  %v3276_v36 = vor.u32 %v3693_v31, %v3275_v30  ;;  %v3625_v38 = vld [vmem:[%s4157_s6 + $0x44c] sm:$0xf0]  ;;  %1931 = vmatpush.bf16.msrb.mxu0 %v3020_v34  ;;  %v3611_v22 = vld [vmem:[%s4157_s6 + $0x3e4] sm:$0xf]  ;;  %v2832_v30 = vor.u32 %v3579_v15, %v2829_v16 }
  0x5f   : > { %v3003_v37 = vld [vmem:[%s4157_s6 + $0x440] sm:$0xf]  ;;  %v3404_v40 = vor.u32 %v3725_v33, %v3403_v32  ;;  %v3657_v41 = vld [vmem:[%s4157_s6 + $0x54c] sm:$0xf0]  ;;  %v2957_v23 = vld [vmem:[%s4157_s6 + $0x3f0] sm:$0xf0] }
  0x60   : > { %v3131_v39 = vld [vmem:[%s4157_s6 + $0x540] sm:$0xf]  ;;  %v3689_v43 = vld [vmem:[%s4157_s6 + $0x64c] sm:$0xf0]  ;;  %v3004_v46 = vor.u32 %v3625_v38, %v3003_v37  ;;  %1944 = vmatpush.bf16.msrb.mxu1 %v3148_v35  ;;  %1957 = vmatpush.bf16.msrb.mxu2 %v3276_v36  ;;  %v3511_v31 = vld [vmem:[%s4157_s6 + $0xc4] sm:$0xf]  ;;  %v2960_v34 = vor.u32 %v3611_v22, %v2957_v23  ;;  %v4317_v38 = vpack.c.b16 %v577_v17, %v577_v17 }
  0x61   : > { %v3259_v42 = vld [vmem:[%s4157_s6 + $0x640] sm:$0xf]  ;;  %v3721_v45 = vld [vmem:[%s4157_s6 + $0x74c] sm:$0xf0]  ;;  %v3132_v47 = vor.u32 %v3657_v41, %v3131_v39  ;;  %1970 = vmatpush.bf16.msrb.mxu3 %v3404_v40  ;;  %v2557_v32 = vld [vmem:[%s4157_s6 + $0xd0] sm:$0xf0] }
  0x62   : > { %v3387_v44 = vld [vmem:[%s4157_s6 + $0x740] sm:$0xf]  ;;  %v3260_v48 = vor.u32 %v3689_v43, %v3259_v42  ;;  %v3621_v50 = vld [vmem:[%s4157_s6 + $0x42c] sm:$0xf0]  ;;  %1932 = vmatpush.bf16.msrb.mxu0 %v3004_v46  ;;  %v3543_v33 = vld [vmem:[%s4157_s6 + $0x1c4] sm:$0xf]  ;;  %v4323_v42 = vpack.c.b16 %v578_v25, %v578_v25  ;;  %v2560_v43 = vor.u32 %v3511_v31, %v2557_v32 }
  0x63   : > { %v2987_v49 = vld [vmem:[%s4157_s6 + $0x420] sm:$0xf]  ;;  %v3388_v52 = vor.u32 %v3721_v45, %v3387_v44  ;;  %v3653_v53 = vld [vmem:[%s4157_s6 + $0x52c] sm:$0xf0]  ;;  %v2685_v35 = vld [vmem:[%s4157_s6 + $0x1d0] sm:$0xf0] }
  0x64   : > { %v3115_v51 = vld [vmem:[%s4157_s6 + $0x520] sm:$0xf]  ;;  %v3685_v55 = vld [vmem:[%s4157_s6 + $0x62c] sm:$0xf0]  ;;  %v2988_v59 = vor.u32 %v3621_v50, %v2987_v49  ;;  %1945 = vmatpush.bf16.msrb.mxu1 %v3132_v47  ;;  %1958 = vmatpush.bf16.msrb.mxu2 %v3260_v48  ;;  %v3575_v36 = vld [vmem:[%s4157_s6 + $0x2c4] sm:$0xf]  ;;  %v2688_v45 = vor.u32 %v3543_v33, %v2685_v35 }
  0x65   : > { %v3243_v54 = vld [vmem:[%s4157_s6 + $0x620] sm:$0xf]  ;;  %v3717_v57 = vld [vmem:[%s4157_s6 + $0x72c] sm:$0xf0]  ;;  %v3116_v63 = vor.u32 %v3653_v53, %v3115_v51  ;;  %1971 = vmatpush.bf16.msrb.mxu3 %v3388_v52  ;;  %v2813_v37 = vld [vmem:[%s4157_s6 + $0x2d0] sm:$0xf0] }
  0x66   : > { %v3371_v56 = vld [vmem:[%s4157_s6 + $0x720] sm:$0xf]  ;;  %v3617_v60 = vld [vmem:[%s4157_s6 + $0x40c] sm:$0xf0]  ;;  %v3244_v0 = vor.u32 %v3685_v55, %v3243_v54  ;;  %1933 = vmatpush.bf16.msrb.mxu0 %v2988_v59  ;;  %v3607_v39 = vld [vmem:[%s4157_s6 + $0x3c4] sm:$0xf]  ;;  %v2816_v46 = vor.u32 %v3575_v36, %v2813_v37 }
  0x67   : > { %v2971_v58 = vld [vmem:[%s4157_s6 + $0x400] sm:$0xf]  ;;  %v3649_v62 = vld [vmem:[%s4157_s6 + $0x50c] sm:$0xf0]  ;;  %v3372_v5 = vor.u32 %v3717_v57, %v3371_v56  ;;  %v2941_v40 = vld [vmem:[%s4157_s6 + $0x3d0] sm:$0xf0] }
  0x68   : > { %v3099_v61 = vld [vmem:[%s4157_s6 + $0x500] sm:$0xf]  ;;  %v3681_v2 = vld [vmem:[%s4157_s6 + $0x60c] sm:$0xf0]  ;;  %v2972_v13 = vor.u32 %v3617_v60, %v2971_v58  ;;  %1946 = vmatpush.bf16.msrb.mxu1 %v3116_v63  ;;  %1959 = vmatpush.bf16.msrb.mxu2 %v3244_v0  ;;  %v3507_v47 = vld [vmem:[%s4157_s6 + $0xa4] sm:$0xf]  ;;  %v2944_v50 = vor.u32 %v3607_v39, %v2941_v40 }
  0x69   : > { %v3227_v1 = vld [vmem:[%s4157_s6 + $0x600] sm:$0xf]  ;;  %v3713_v8 = vld [vmem:[%s4157_s6 + $0x70c] sm:$0xf0]  ;;  %v3100_v18 = vor.u32 %v3649_v62, %v3099_v61  ;;  %1972 = vmatpush.bf16.msrb.mxu3 %v3372_v5  ;;  %v2541_v48 = vld [vmem:[%s4157_s6 + $0xb0] sm:$0xf0] }
  0x6a   : > { %v3355_v7 = vld [vmem:[%s4157_s6 + $0x700] sm:$0xf]  ;;  %v309_v9 = vld [vmem:[#allocation2 + $0x10] sm:$0xff]  ;;  %v3228_v19 = vor.u32 %v3681_v2, %v3227_v1  ;;  %1934 = vmatpush.bf16.msrb.mxu0 %v2972_v13  ;;  %v3539_v49 = vld [vmem:[%s4157_s6 + $0x1a4] sm:$0xf]  ;;  %v2544_v56 = vor.u32 %v3507_v47, %v2541_v48 }
  0x6b   : > { %v575_v24 = vunpack.c.l.b16 %v309_v9  ;;  %v3356_v26 = vor.u32 %v3713_v8, %v3355_v7  ;;  %v576_v28 = vunpack.c.h.b16 %v309_v9  ;;  %v2669_v51 = vld [vmem:[%s4157_s6 + $0x1b0] sm:$0xf0]  ;;  %v3571_v52 = vld [vmem:[%s4157_s6 + $0x2a4] sm:$0xf] }
  0x6c   : > { %1947 = vmatpush.bf16.msrb.mxu1 %v3100_v18  ;;  %1960 = vmatpush.bf16.msrb.mxu2 %v3228_v19  ;;  %v2797_v53 = vld [vmem:[%s4157_s6 + $0x2b0] sm:$0xf0]  ;;  %v3603_v54 = vld [vmem:[%s4157_s6 + $0x3a4] sm:$0xf]  ;;  %v2672_v57 = vor.u32 %v3539_v49, %v2669_v51 }
  0x6d   : > { %v4321_v41 = vpack.c.b16 %v575_v24, %v575_v24  ;;  %1973 = vmatpush.bf16.msrb.mxu3 %v3356_v26  ;;  %v4325_v44 = vpack.c.b16 %v576_v28, %v576_v28  ;;  %v2925_v55 = vld [vmem:[%s4157_s6 + $0x3b0] sm:$0xf0]  ;;  %v2800_v58 = vor.u32 %v3571_v52, %v2797_v53  ;;  %v3503_v59 = vld [vmem:[%s4157_s6 + $0x84] sm:$0xf] }
  0x6e   : > { %1979 = vmatpush.bf16.msra.mxu0 %v2576_v27  ;;  %v2525_v60 = vld [vmem:[%s4157_s6 + $0x90] sm:$0xf0]  ;;  %v3535_v61 = vld [vmem:[%s4157_s6 + $0x184] sm:$0xf]  ;;  %v2928_v62 = vor.u32 %v3603_v54, %v2925_v55 }
  0x6f   : > { %1961 = vmatmul.bf16.vlgmr.msrb.gmra.mxu2 %v4317_v38  ;;  %1935 = vmatmul.bf16.vlgmr.msrb.gmra.mxu0 %v4321_v41  ;;  %v2653_v63 = vld [vmem:[%s4157_s6 + $0x190] sm:$0xf0]  ;;  %v3567_v0 = vld [vmem:[%s4157_s6 + $0x284] sm:$0xf]  ;;  %v2528_v5 = vor.u32 %v3503_v59, %v2525_v60 }
  0x70   : > { %1992 = vmatpush.bf16.msra.mxu1 %v2704_v29  ;;  %2005 = vmatpush.bf16.msra.mxu2 %v2832_v30  ;;  %v2781_v1 = vld [vmem:[%s4157_s6 + $0x290] sm:$0xf0]  ;;  %v3599_v2 = vld [vmem:[%s4157_s6 + $0x384] sm:$0xf]  ;;  %v2656_v7 = vor.u32 %v3535_v61, %v2653_v63 }
  0x71   : > { %2018 = vmatpush.bf16.msra.mxu3 %v2960_v34  ;;  %1948 = vmatmul.bf16.vlgmr.msrb.gmra.mxu1 %v4325_v44  ;;  %v2909_v3 = vld [vmem:[%s4157_s6 + $0x390] sm:$0xf0]  ;;  %v2784_v8 = vor.u32 %v3567_v0, %v2781_v1  ;;  %v3499_v9 = vld [vmem:[%s4157_s6 + $0x64] sm:$0xf] }
  0x72   : > { %1974 = vmatmul.bf16.vlgmr.msrb.gmra.mxu3 %v4323_v42  ;;  %1980 = vmatpush.bf16.msra.mxu0 %v2560_v43  ;;  %v2509_v10 = vld [vmem:[%s4157_s6 + $0x70] sm:$0xf0]  ;;  %v3531_v11 = vld [vmem:[%s4157_s6 + $0x164] sm:$0xf]  ;;  %v2912_v12 = vor.u32 %v3599_v2, %v2909_v3 }
  0x73   : > { %v2637_v13 = vld [vmem:[%s4157_s6 + $0x170] sm:$0xf0]  ;;  %v3563_v14 = vld [vmem:[%s4157_s6 + $0x264] sm:$0xf]  ;;  %v2512_v18 = vor.u32 %v3499_v9, %v2509_v10 }
  0x74   : > { %1993 = vmatpush.bf16.msra.mxu1 %v2688_v45  ;;  %2006 = vmatpush.bf16.msra.mxu2 %v2816_v46  ;;  %v2765_v15 = vld [vmem:[%s4157_s6 + $0x270] sm:$0xf0]  ;;  %v3595_v16 = vld [vmem:[%s4157_s6 + $0x364] sm:$0xf]  ;;  %v2640_v19 = vor.u32 %v3531_v11, %v2637_v13 }
  0x75   : > { %2019 = vmatpush.bf16.msra.mxu3 %v2944_v50  ;;  %v2893_v17 = vld [vmem:[%s4157_s6 + $0x370] sm:$0xf0]  ;;  %v2768_v22 = vor.u32 %v3563_v14, %v2765_v15  ;;  %v3495_v23 = vld [vmem:[%s4157_s6 + $0x44] sm:$0xf] }
  0x76   : > { %1981 = vmatpush.bf16.msra.mxu0 %v2544_v56  ;;  %v2493_v24 = vld [vmem:[%s4157_s6 + $0x50] sm:$0xf0]  ;;  %v3527_v25 = vld [vmem:[%s4157_s6 + $0x144] sm:$0xf]  ;;  %v2896_v26 = vor.u32 %v3595_v16, %v2893_v17 }
  0x77   : > { %v2621_v27 = vld [vmem:[%s4157_s6 + $0x150] sm:$0xf0]  ;;  %v3559_v28 = vld [vmem:[%s4157_s6 + $0x244] sm:$0xf]  ;;  %v2496_v32 = vor.u32 %v3495_v23, %v2493_v24 }
  0x78   : > { %1994 = vmatpush.bf16.msra.mxu1 %v2672_v57  ;;  %2007 = vmatpush.bf16.msra.mxu2 %v2800_v58  ;;  %v2749_v29 = vld [vmem:[%s4157_s6 + $0x250] sm:$0xf0]  ;;  %v3591_v30 = vld [vmem:[%s4157_s6 + $0x344] sm:$0xf]  ;;  %v2624_v33 = vor.u32 %v3527_v25, %v2621_v27 }
  0x79   : > { %2020 = vmatpush.bf16.msra.mxu3 %v2928_v62  ;;  %v2877_v31 = vld [vmem:[%s4157_s6 + $0x350] sm:$0xf0]  ;;  %v2752_v34 = vor.u32 %v3559_v28, %v2749_v29  ;;  %v3491_v35 = vld [vmem:[%s4157_s6 + $0x24] sm:$0xf] }
  0x7a   : > { %1982 = vmatpush.bf16.msra.mxu0 %v2528_v5  ;;  %v2477_v36 = vld [vmem:[%s4157_s6 + $0x30] sm:$0xf0]  ;;  %v3523_v37 = vld [vmem:[%s4157_s6 + $0x124] sm:$0xf]  ;;  %v2880_v39 = vor.u32 %v3591_v30, %v2877_v31 }
  0x7b   : > { %v2605_v40 = vld [vmem:[%s4157_s6 + $0x130] sm:$0xf0]  ;;  %v3555_v43 = vld [vmem:[%s4157_s6 + $0x224] sm:$0xf]  ;;  %v2480_v48 = vor.u32 %v3491_v35, %v2477_v36 }
  0x7c   : > { %1995 = vmatpush.bf16.msra.mxu1 %v2656_v7  ;;  %2008 = vmatpush.bf16.msra.mxu2 %v2784_v8  ;;  %v2733_v45 = vld [vmem:[%s4157_s6 + $0x230] sm:$0xf0]  ;;  %v3587_v46 = vld [vmem:[%s4157_s6 + $0x324] sm:$0xf]  ;;  %v2608_v51 = vor.u32 %v3523_v37, %v2605_v40 }
  0x7d   : > { %2021 = vmatpush.bf16.msra.mxu3 %v2912_v12  ;;  %v2861_v47 = vld [vmem:[%s4157_s6 + $0x330] sm:$0xf0]  ;;  %v3487_v49 = vld [vmem:[%s4157_s6 + $0x4] sm:$0xf]  ;;  %v2736_v52 = vor.u32 %v3555_v43, %v2733_v45 }
  0x7e   : > { %1983 = vmatpush.bf16.msra.mxu0 %v2512_v18  ;;  %v2461_v50 = vld [vmem:[%s4157_s6 + $0x10] sm:$0xf0]  ;;  %v3519_v53 = vld [vmem:[%s4157_s6 + $0x104] sm:$0xf]  ;;  %v2864_v56 = vor.u32 %v3587_v46, %v2861_v47 }
  0x7f   : > { %v2589_v54 = vld [vmem:[%s4157_s6 + $0x110] sm:$0xf0]  ;;  %v3551_v55 = vld [vmem:[%s4157_s6 + $0x204] sm:$0xf]  ;;  %v2464_v63 = vor.u32 %v3487_v49, %v2461_v50 }
  0x80   : > { %1996 = vmatpush.bf16.msra.mxu1 %v2640_v19  ;;  %2009 = vmatpush.bf16.msra.mxu2 %v2768_v22  ;;  %v2717_v57 = vld [vmem:[%s4157_s6 + $0x210] sm:$0xf0]  ;;  %v3583_v58 = vld [vmem:[%s4157_s6 + $0x304] sm:$0xf]  ;;  %v2592_v3 = vor.u32 %v3519_v53, %v2589_v54 }
  0x81   : > { %2022 = vmatpush.bf16.msra.mxu3 %v2896_v26  ;;  %v2845_v59 = vld [vmem:[%s4157_s6 + $0x310] sm:$0xf0]  ;;  %v3643_v60 = vld [vmem:[%s4157_s6 + $0x4e4] sm:$0xf]  ;;  %v2720_v5 = vor.u32 %v3551_v55, %v2717_v57 }
  0x82   : > { %1984 = vmatpush.bf16.msra.mxu0 %v2496_v32  ;;  %v3085_v61 = vld [vmem:[%s4157_s6 + $0x4f0] sm:$0xf0]  ;;  %v3675_v62 = vld [vmem:[%s4157_s6 + $0x5e4] sm:$0xf]  ;;  %v2848_v9 = vor.u32 %v3583_v58, %v2845_v59 }
  0x83   : > { %v3213_v0 = vld [vmem:[%s4157_s6 + $0x5f0] sm:$0xf0]  ;;  %v3707_v1 = vld [vmem:[%s4157_s6 + $0x6e4] sm:$0xf]  ;;  %v3088_v10 = vor.u32 %v3643_v60, %v3085_v61 }
  0x84   : > { %1997 = vmatpush.bf16.msra.mxu1 %v2624_v33  ;;  %2010 = vmatpush.bf16.msra.mxu2 %v2752_v34  ;;  %v3341_v2 = vld [vmem:[%s4157_s6 + $0x6f0] sm:$0xf0]  ;;  %v3739_v7 = vld [vmem:[%s4157_s6 + $0x7e4] sm:$0xf]  ;;  %v3216_v11 = vor.u32 %v3675_v62, %v3213_v0 }
  0x85   : > { %2023 = vmatpush.bf16.msra.mxu3 %v2880_v39  ;;  %v3469_v8 = vld [vmem:[%s4157_s6 + $0x7f0] sm:$0xf0]  ;;  %v3344_v12 = vor.u32 %v3707_v1, %v3341_v2  ;;  %v3639_v13 = vld [vmem:[%s4157_s6 + $0x4c4] sm:$0xf] }
  0x86   : > { %1985 = vmatpush.bf16.msra.mxu0 %v2480_v48  ;;  %v3069_v14 = vld [vmem:[%s4157_s6 + $0x4d0] sm:$0xf0]  ;;  %v3671_v15 = vld [vmem:[%s4157_s6 + $0x5c4] sm:$0xf]  ;;  %v3472_v16 = vor.u32 %v3739_v7, %v3469_v8 }
  0x87   : > { %v3197_v17 = vld [vmem:[%s4157_s6 + $0x5d0] sm:$0xf0]  ;;  %v3703_v18 = vld [vmem:[%s4157_s6 + $0x6c4] sm:$0xf]  ;;  %v3072_v24 = vor.u32 %v3639_v13, %v3069_v14 }
  0x88   : > { %1998 = vmatpush.bf16.msra.mxu1 %v2608_v51  ;;  %2011 = vmatpush.bf16.msra.mxu2 %v2736_v52  ;;  %v3325_v19 = vld [vmem:[%s4157_s6 + $0x6d0] sm:$0xf0]  ;;  %v3735_v22 = vld [vmem:[%s4157_s6 + $0x7c4] sm:$0xf]  ;;  %v3200_v25 = vor.u32 %v3671_v15, %v3197_v17 }
  0x89   : > { %2024 = vmatpush.bf16.msra.mxu3 %v2864_v56  ;;  %v3453_v23 = vld [vmem:[%s4157_s6 + $0x7d0] sm:$0xf0]  ;;  %v3328_v26 = vor.u32 %v3703_v18, %v3325_v19  ;;  %v3635_v27 = vld [vmem:[%s4157_s6 + $0x4a4] sm:$0xf] }
  0x8a   : > { %1986 = vmatpush.bf16.msra.mxu0 %v2464_v63  ;;  %v3053_v28 = vld [vmem:[%s4157_s6 + $0x4b0] sm:$0xf0]  ;;  %v3667_v29 = vld [vmem:[%s4157_s6 + $0x5a4] sm:$0xf]  ;;  %v3456_v30 = vor.u32 %v3735_v22, %v3453_v23 }
  0x8b   : > { %v3181_v31 = vld [vmem:[%s4157_s6 + $0x5b0] sm:$0xf0]  ;;  %v3699_v32 = vld [vmem:[%s4157_s6 + $0x6a4] sm:$0xf]  ;;  %v3056_v36 = vor.u32 %v3635_v27, %v3053_v28 }
  0x8c   : > { %1999 = vmatpush.bf16.msra.mxu1 %v2592_v3  ;;  %2012 = vmatpush.bf16.msra.mxu2 %v2720_v5  ;;  %v3309_v33 = vld [vmem:[%s4157_s6 + $0x6b0] sm:$0xf0]  ;;  %v3731_v34 = vld [vmem:[%s4157_s6 + $0x7a4] sm:$0xf]  ;;  %v3184_v37 = vor.u32 %v3667_v29, %v3181_v31 }
  0x8d   : > { %2025 = vmatpush.bf16.msra.mxu3 %v2848_v9  ;;  %v3437_v35 = vld [vmem:[%s4157_s6 + $0x7b0] sm:$0xf0]  ;;  %1987 = vmatmul.bf16.vlgmr.msra.gmra.mxu0 %v4264_v20  ;;  %v3312_v39 = vor.u32 %v3699_v32, %v3309_v33  ;;  %v3631_v40 = vld [vmem:[%s4157_s6 + $0x484] sm:$0xf] }
  0x8e   : > { %2031 = vmatpush.bf16.msrb.mxu0 %v3088_v10  ;;  %v3037_v43 = vld [vmem:[%s4157_s6 + $0x490] sm:$0xf0]  ;;  %v3663_v45 = vld [vmem:[%s4157_s6 + $0x584] sm:$0xf]  ;;  %v3440_v46 = vor.u32 %v3731_v34, %v3437_v35 }
  0x8f   : > { %2013 = vmatmul.bf16.vlgmr.msra.gmra.mxu2 %v4251_v4  ;;  %2000 = vmatmul.bf16.vlgmr.msra.gmra.mxu1 %v4267_v21  ;;  %v3165_v47 = vld [vmem:[%s4157_s6 + $0x590] sm:$0xf0]  ;;  %v3695_v48 = vld [vmem:[%s4157_s6 + $0x684] sm:$0xf]  ;;  %v3040_v52 = vor.u32 %v3631_v40, %v3037_v43  ;;  %v2579_v43 = vld [vmem:[%s4157_s6 + $0xe8] sm:$0xf] }
  0x90   : > { %2044 = vmatpush.bf16.msrb.mxu1 %v3216_v11  ;;  %2057 = vmatpush.bf16.msrb.mxu2 %v3344_v12  ;;  %v3293_v49 = vld [vmem:[%s4157_s6 + $0x690] sm:$0xf0]  ;;  %v3727_v50 = vld [vmem:[%s4157_s6 + $0x784] sm:$0xf]  ;;  %v3168_v53 = vor.u32 %v3663_v45, %v3165_v47  ;;  %v3518_v45 = vld [vmem:[%s4157_s6 + $0xf4] sm:$0xf0] }
  0x91   : > { %2070 = vmatpush.bf16.msrb.mxu3 %v3472_v16  ;;  %v3421_v51 = vld [vmem:[%s4157_s6 + $0x790] sm:$0xf0]  ;;  %v3296_v54 = vor.u32 %v3695_v48, %v3293_v49  ;;  %v3627_v55 = vld [vmem:[%s4157_s6 + $0x464] sm:$0xf]  ;;  %v3550_v48 = vld [vmem:[%s4157_s6 + $0x1f4] sm:$0xf0] }
  0x92   : > { %2026 = vmatmul.bf16.vlgmr.msra.gmra.mxu3 %v4253_v6  ;;  %2032 = vmatpush.bf16.msrb.mxu0 %v3072_v24  ;;  %v3021_v56 = vld [vmem:[%s4157_s6 + $0x470] sm:$0xf0]  ;;  %v3659_v57 = vld [vmem:[%s4157_s6 + $0x564] sm:$0xf]  ;;  %v3424_v58 = vor.u32 %v3727_v50, %v3421_v51  ;;  %v2835_v49 = vld [vmem:[%s4157_s6 + $0x2e8] sm:$0xf] }
  0x93   : > { %v3149_v59 = vld [vmem:[%s4157_s6 + $0x570] sm:$0xf0]  ;;  %v3691_v60 = vld [vmem:[%s4157_s6 + $0x664] sm:$0xf]  ;;  %v3024_v0 = vor.u32 %v3627_v55, %v3021_v56  ;;  %v3582_v50 = vld [vmem:[%s4157_s6 + $0x2f4] sm:$0xf0]  ;;  %v2580_v56 = vor.u32 %v3518_v45, %v2579_v43 }
  0x94   : > { %2045 = vmatpush.bf16.msrb.mxu1 %v3200_v25  ;;  %2058 = vmatpush.bf16.msrb.mxu2 %v3328_v26  ;;  %v3277_v61 = vld [vmem:[%s4157_s6 + $0x670] sm:$0xf0]  ;;  %v3723_v62 = vld [vmem:[%s4157_s6 + $0x764] sm:$0xf]  ;;  %v3152_v1 = vor.u32 %v3659_v57, %v3149_v59  ;;  %v2563_v59 = vld [vmem:[%s4157_s6 + $0xc8] sm:$0xf] }
  0x95   : > { %2071 = vmatpush.bf16.msrb.mxu3 %v3456_v30  ;;  %v3405_v63 = vld [vmem:[%s4157_s6 + $0x770] sm:$0xf0]  ;;  %v3280_v2 = vor.u32 %v3691_v60, %v3277_v61  ;;  %v3623_v3 = vld [vmem:[%s4157_s6 + $0x444] sm:$0xf]  ;;  %v3514_v60 = vld [vmem:[%s4157_s6 + $0xd4] sm:$0xf0] }
  0x96   : > { %2033 = vmatpush.bf16.msrb.mxu0 %v3056_v36  ;;  %v3005_v5 = vld [vmem:[%s4157_s6 + $0x450] sm:$0xf0]  ;;  %v3655_v7 = vld [vmem:[%s4157_s6 + $0x544] sm:$0xf]  ;;  %v3408_v8 = vor.u32 %v3723_v62, %v3405_v63  ;;  %v2691_v61 = vld [vmem:[%s4157_s6 + $0x1c8] sm:$0xf] }
  0x97   : > { %v3133_v9 = vld [vmem:[%s4157_s6 + $0x550] sm:$0xf0]  ;;  %v3687_v10 = vld [vmem:[%s4157_s6 + $0x644] sm:$0xf]  ;;  %v3008_v14 = vor.u32 %v3623_v3, %v3005_v5  ;;  %v3546_v63 = vld [vmem:[%s4157_s6 + $0x1d4] sm:$0xf0]  ;;  %v2564_v5 = vor.u32 %v3514_v60, %v2563_v59 }
  0x98   : > { %2046 = vmatpush.bf16.msrb.mxu1 %v3184_v37  ;;  %2059 = vmatpush.bf16.msrb.mxu2 %v3312_v39  ;;  %v3261_v11 = vld [vmem:[%s4157_s6 + $0x650] sm:$0xf0]  ;;  %v3719_v12 = vld [vmem:[%s4157_s6 + $0x744] sm:$0xf]  ;;  %v3136_v15 = vor.u32 %v3655_v7, %v3133_v9  ;;  %v3610_v3 = vld [vmem:[%s4157_s6 + $0x3d4] sm:$0xf0]  ;;  %v2692_v7 = vor.u32 %v3546_v63, %v2691_v61 }
  0x99   : > { %2072 = vmatpush.bf16.msrb.mxu3 %v3440_v46  ;;  %v3389_v13 = vld [vmem:[%s4157_s6 + $0x750] sm:$0xf0]  ;;  %v3264_v16 = vor.u32 %v3687_v10, %v3261_v11  ;;  %v3619_v17 = vld [vmem:[%s4157_s6 + $0x424] sm:$0xf]  ;;  %v2707_v46 = vld [vmem:[%s4157_s6 + $0x1e8] sm:$0xf] }
  0x9a   : > { %2034 = vmatpush.bf16.msrb.mxu0 %v3040_v52  ;;  %v2989_v18 = vld [vmem:[%s4157_s6 + $0x430] sm:$0xf0]  ;;  %v3651_v19 = vld [vmem:[%s4157_s6 + $0x524] sm:$0xf]  ;;  %v3392_v22 = vor.u32 %v3719_v12, %v3389_v13  ;;  %v2708_v57 = vor.u32 %v3550_v48, %v2707_v46  ;;  %v2547_v9 = vld [vmem:[%s4157_s6 + $0xa8] sm:$0xf] }
  0x9b   : > { %v3117_v23 = vld [vmem:[%s4157_s6 + $0x530] sm:$0xf0]  ;;  %v3683_v24 = vld [vmem:[%s4157_s6 + $0x624] sm:$0xf]  ;;  %v2992_v28 = vor.u32 %v3619_v17, %v2989_v18  ;;  %v3510_v10 = vld [vmem:[%s4157_s6 + $0xb4] sm:$0xf0] }
  0x9c   : > { %2047 = vmatpush.bf16.msrb.mxu1 %v3168_v53  ;;  %2060 = vmatpush.bf16.msrb.mxu2 %v3296_v54  ;;  %v3245_v25 = vld [vmem:[%s4157_s6 + $0x630] sm:$0xf0]  ;;  %v3715_v26 = vld [vmem:[%s4157_s6 + $0x724] sm:$0xf]  ;;  %v3120_v31 = vor.u32 %v3651_v19, %v3117_v23  ;;  %v2963_v53 = vld [vmem:[%s4157_s6 + $0x3e8] sm:$0xf]  ;;  %v2548_v18 = vor.u32 %v3510_v10, %v2547_v9 }
  0x9d   : > { %2073 = vmatpush.bf16.msrb.mxu3 %v3424_v58  ;;  %v3373_v27 = vld [vmem:[%s4157_s6 + $0x730] sm:$0xf0]  ;;  %v3615_v29 = vld [vmem:[%s4157_s6 + $0x404] sm:$0xf]  ;;  %v3248_v32 = vor.u32 %v3683_v24, %v3245_v25  ;;  %v3614_v54 = vld [vmem:[%s4157_s6 + $0x3f4] sm:$0xf0]  ;;  %v2836_v58 = vor.u32 %v3582_v50, %v2835_v49 }
  0x9e   : > { %2035 = vmatpush.bf16.msrb.mxu0 %v3024_v0  ;;  %v2973_v30 = vld [vmem:[%s4157_s6 + $0x410] sm:$0xf0]  ;;  %v3647_v33 = vld [vmem:[%s4157_s6 + $0x504] sm:$0xf]  ;;  %v3376_v36 = vor.u32 %v3715_v26, %v3373_v27  ;;  %v2964_v62 = vor.u32 %v3614_v54, %v2963_v53  ;;  %v2819_v0 = vld [vmem:[%s4157_s6 + $0x2c8] sm:$0xf] }
  0x9f   : > { %v3101_v34 = vld [vmem:[%s4157_s6 + $0x510] sm:$0xf0]  ;;  %v3679_v35 = vld [vmem:[%s4157_s6 + $0x604] sm:$0xf]  ;;  %v2976_v47 = vor.u32 %v3615_v29, %v2973_v30  ;;  %v2675_v11 = vld [vmem:[%s4157_s6 + $0x1a8] sm:$0xf] }
  0xa0   : > { %2048 = vmatpush.bf16.msrb.mxu1 %v3152_v1  ;;  %2061 = vmatpush.bf16.msrb.mxu2 %v3280_v2  ;;  %v3229_v37 = vld [vmem:[%s4157_s6 + $0x610] sm:$0xf0]  ;;  %v3711_v39 = vld [vmem:[%s4157_s6 + $0x704] sm:$0xf]  ;;  %v3104_v51 = vor.u32 %v3647_v33, %v3101_v34  ;;  %v3578_v1 = vld [vmem:[%s4157_s6 + $0x2d4] sm:$0xf0] }
  0xa1   : > { %2074 = vmatpush.bf16.msrb.mxu3 %v3408_v8  ;;  %v3357_v40 = vld [vmem:[%s4157_s6 + $0x710] sm:$0xf0]  ;;  %v3232_v52 = vor.u32 %v3679_v35, %v3229_v37  ;;  %v2947_v2 = vld [vmem:[%s4157_s6 + $0x3c8] sm:$0xf]  ;;  %v2820_v8 = vor.u32 %v3578_v1, %v2819_v0  ;;  %v3542_v13 = vld [vmem:[%s4157_s6 + $0x1b4] sm:$0xf0] }
  0xa2   : > { %2036 = vmatpush.bf16.msrb.mxu0 %v3008_v14  ;;  %v3360_v55 = vor.u32 %v3711_v39, %v3357_v40  ;;  %v2948_v12 = vor.u32 %v3610_v3, %v2947_v2  ;;  %v2803_v14 = vld [vmem:[%s4157_s6 + $0x2a8] sm:$0xf]  ;;  %v3606_v17 = vld [vmem:[%s4157_s6 + $0x3b4] sm:$0xf0]  ;;  %v2676_v19 = vor.u32 %v3542_v13, %v2675_v11 }
  0xa3   : > { %v2531_v23 = vld [vmem:[%s4157_s6 + $0x88] sm:$0xf]  ;;  %v3506_v24 = vld [vmem:[%s4157_s6 + $0x94] sm:$0xf0] }
  0xa4   : > { %2049 = vmatpush.bf16.msrb.mxu1 %v3136_v15  ;;  %2062 = vmatpush.bf16.msrb.mxu2 %v3264_v16  ;;  %v3574_v15 = vld [vmem:[%s4157_s6 + $0x2b4] sm:$0xf0]  ;;  %v2931_v16 = vld [vmem:[%s4157_s6 + $0x3a8] sm:$0xf] }
  0xa5   : > { %2075 = vmatpush.bf16.msrb.mxu3 %v3392_v22  ;;  %v2804_v22 = vor.u32 %v3574_v15, %v2803_v14  ;;  %v2659_v25 = vld [vmem:[%s4157_s6 + $0x188] sm:$0xf]  ;;  %v2932_v26 = vor.u32 %v3606_v17, %v2931_v16  ;;  %v3538_v27 = vld [vmem:[%s4157_s6 + $0x194] sm:$0xf0] }
  0xa6   : > { %2037 = vmatpush.bf16.msrb.mxu0 %v2992_v28  ;;  %v2787_v28 = vld [vmem:[%s4157_s6 + $0x288] sm:$0xf]  ;;  %v3570_v29 = vld [vmem:[%s4157_s6 + $0x294] sm:$0xf0]  ;;  %v2660_v33 = vor.u32 %v3538_v27, %v2659_v25 }
  0xa7   : > { %v2915_v30 = vld [vmem:[%s4157_s6 + $0x388] sm:$0xf]  ;;  %v2788_v34 = vor.u32 %v3570_v29, %v2787_v28  ;;  %v3534_v40 = vld [vmem:[%s4157_s6 + $0x174] sm:$0xf0] }
  0xa8   : > { %2050 = vmatpush.bf16.msrb.mxu1 %v3120_v31  ;;  %2063 = vmatpush.bf16.msrb.mxu2 %v3248_v32  ;;  %v3602_v31 = vld [vmem:[%s4157_s6 + $0x394] sm:$0xf0]  ;;  %v2532_v32 = vor.u32 %v3506_v24, %v2531_v23  ;;  %v2515_v35 = vld [vmem:[%s4157_s6 + $0x68] sm:$0xf] }
  0xa9   : > { %2076 = vmatpush.bf16.msrb.mxu3 %v3376_v36  ;;  %v3502_v36 = vld [vmem:[%s4157_s6 + $0x74] sm:$0xf0]  ;;  %v2643_v37 = vld [vmem:[%s4157_s6 + $0x168] sm:$0xf]  ;;  %v2916_v39 = vor.u32 %v3602_v31, %v2915_v30 }
  0xaa   : > { %2038 = vmatpush.bf16.msrb.mxu0 %v2976_v47  ;;  %v2771_v43 = vld [vmem:[%s4157_s6 + $0x268] sm:$0xf]  ;;  %v3566_v45 = vld [vmem:[%s4157_s6 + $0x274] sm:$0xf0]  ;;  %v2516_v48 = vor.u32 %v3502_v36, %v2515_v35  ;;  %v2644_v49 = vor.u32 %v3534_v40, %v2643_v37 }
  0xab   : > { %v2899_v46 = vld [vmem:[%s4157_s6 + $0x368] sm:$0xf]  ;;  %v3598_v47 = vld [vmem:[%s4157_s6 + $0x374] sm:$0xf0]  ;;  %v2772_v50 = vor.u32 %v3566_v45, %v2771_v43 }
  0xac   : > { %2051 = vmatpush.bf16.msrb.mxu1 %v3104_v51  ;;  %2064 = vmatpush.bf16.msrb.mxu2 %v3232_v52  ;;  %v2499_v51 = vld [vmem:[%s4157_s6 + $0x48] sm:$0xf]  ;;  %v3498_v52 = vld [vmem:[%s4157_s6 + $0x54] sm:$0xf0]  ;;  %v2900_v54 = vor.u32 %v3598_v47, %v2899_v46 }
  0xad   : > { %2077 = vmatpush.bf16.msrb.mxu3 %v3360_v55  ;;  %2039 = vmatmul.bf16.vlgmr.msrb.gmra.mxu0 %v4321_v41  ;;  %v2627_v53 = vld [vmem:[%s4157_s6 + $0x148] sm:$0xf]  ;;  %v3530_v55 = vld [vmem:[%s4157_s6 + $0x154] sm:$0xf0]  ;;  %v2500_v60 = vor.u32 %v3498_v52, %v2499_v51 }
  0xae   : > { %2083 = vmatpush.bf16.msra.mxu0 %v2580_v56  ;;  %v2755_v56 = vld [vmem:[%s4157_s6 + $0x248] sm:$0xf]  ;;  %v3594_v59 = vld [vmem:[%s4157_s6 + $0x354] sm:$0xf0]  ;;  %v2628_v61 = vor.u32 %v3530_v55, %v2627_v53 }
  0xaf   : > { %2065 = vmatmul.bf16.vlgmr.msrb.gmra.mxu2 %v4317_v38  ;;  %2052 = vmatmul.bf16.vlgmr.msrb.gmra.mxu1 %v4325_v44  ;;  %v2483_v63 = vld [vmem:[%s4157_s6 + $0x28] sm:$0xf]  ;;  %v3494_v0 = vld [vmem:[%s4157_s6 + $0x34] sm:$0xf0] }
  0xb0   : > { %2096 = vmatpush.bf16.msra.mxu1 %v2708_v57  ;;  %2109 = vmatpush.bf16.msra.mxu2 %v2836_v58  ;;  %v3562_v57 = vld [vmem:[%s4157_s6 + $0x254] sm:$0xf0]  ;;  %v2883_v58 = vld [vmem:[%s4157_s6 + $0x348] sm:$0xf]  ;;  %v2484_v10 = vor.u32 %v3494_v0, %v2483_v63 }
  0xb1   : > { %2122 = vmatpush.bf16.msra.mxu3 %v2964_v62  ;;  %v2756_v62 = vor.u32 %v3562_v57, %v2755_v56  ;;  %v2611_v1 = vld [vmem:[%s4157_s6 + $0x128] sm:$0xf]  ;;  %v2884_v2 = vor.u32 %v3594_v59, %v2883_v58  ;;  %v3526_v3 = vld [vmem:[%s4157_s6 + $0x134] sm:$0xf0] }
  0xb2   : > { %2078 = vmatmul.bf16.vlgmr.msrb.gmra.mxu3 %v4323_v42  ;;  %2084 = vmatpush.bf16.msra.mxu0 %v2564_v5  ;;  %v2739_v5 = vld [vmem:[%s4157_s6 + $0x228] sm:$0xf]  ;;  %v3590_v9 = vld [vmem:[%s4157_s6 + $0x334] sm:$0xf0]  ;;  %v2612_v13 = vor.u32 %v3526_v3, %v2611_v1 }
  0xb3   : > { %v2467_v11 = vld [vmem:[%s4157_s6 + $0x8] sm:$0xf]  ;;  %v3522_v16 = vld [vmem:[%s4157_s6 + $0x114] sm:$0xf0] }
  0xb4   : > { %2097 = vmatpush.bf16.msra.mxu1 %v2692_v7  ;;  %2110 = vmatpush.bf16.msra.mxu2 %v2820_v8  ;;  %v3558_v7 = vld [vmem:[%s4157_s6 + $0x234] sm:$0xf0]  ;;  %v2867_v8 = vld [vmem:[%s4157_s6 + $0x328] sm:$0xf] }
  0xb5   : > { %2123 = vmatpush.bf16.msra.mxu3 %v2948_v12  ;;  %v3490_v12 = vld [vmem:[%s4157_s6 + $0x14] sm:$0xf0]  ;;  %v2740_v14 = vor.u32 %v3558_v7, %v2739_v5  ;;  %v2595_v15 = vld [vmem:[%s4157_s6 + $0x108] sm:$0xf] }
  0xb6   : > { %2085 = vmatpush.bf16.msra.mxu0 %v2548_v18  ;;  %v2723_v17 = vld [vmem:[%s4157_s6 + $0x208] sm:$0xf]  ;;  %v2868_v18 = vor.u32 %v3590_v9, %v2867_v8  ;;  %v3586_v23 = vld [vmem:[%s4157_s6 + $0x314] sm:$0xf0]  ;;  %v2468_v27 = vor.u32 %v3490_v12, %v2467_v11  ;;  %v2596_v31 = vor.u32 %v3522_v16, %v2595_v15 }
  0xb7   : > { %v3091_v24 = vld [vmem:[%s4157_s6 + $0x4e8] sm:$0xf]  ;;  %v3646_v25 = vld [vmem:[%s4157_s6 + $0x4f4] sm:$0xf0] }
  0xb8   : > { %2098 = vmatpush.bf16.msra.mxu1 %v2676_v19  ;;  %2111 = vmatpush.bf16.msra.mxu2 %v2804_v22  ;;  %v3554_v19 = vld [vmem:[%s4157_s6 + $0x214] sm:$0xf0]  ;;  %v2851_v22 = vld [vmem:[%s4157_s6 + $0x308] sm:$0xf]  ;;  %v3092_v36 = vor.u32 %v3646_v25, %v3091_v24 }
  0xb9   : > { %2124 = vmatpush.bf16.msra.mxu3 %v2932_v26  ;;  %v3219_v26 = vld [vmem:[%s4157_s6 + $0x5e8] sm:$0xf]  ;;  %v3678_v28 = vld [vmem:[%s4157_s6 + $0x5f4] sm:$0xf0]  ;;  %v2852_v35 = vor.u32 %v3586_v23, %v2851_v22 }
  0xba   : > { %2086 = vmatpush.bf16.msra.mxu0 %v2532_v32  ;;  %v3347_v29 = vld [vmem:[%s4157_s6 + $0x6e8] sm:$0xf]  ;;  %v3710_v30 = vld [vmem:[%s4157_s6 + $0x6f4] sm:$0xf0]  ;;  %v2724_v32 = vor.u32 %v3554_v19, %v2723_v17  ;;  %v3220_v37 = vor.u32 %v3678_v28, %v3219_v26 }
  0xbb   : > { %v3075_v40 = vld [vmem:[%s4157_s6 + $0x4c8] sm:$0xf]  ;;  %v3642_v43 = vld [vmem:[%s4157_s6 + $0x4d4] sm:$0xf0] }
  0xbc   : > { %2099 = vmatpush.bf16.msra.mxu1 %v2660_v33  ;;  %2112 = vmatpush.bf16.msra.mxu2 %v2788_v34  ;;  %v3475_v33 = vld [vmem:[%s4157_s6 + $0x7e8] sm:$0xf]  ;;  %v3742_v34 = vld [vmem:[%s4157_s6 + $0x7f4] sm:$0xf0]  ;;  %v3076_v52 = vor.u32 %v3642_v43, %v3075_v40 }
  0xbd   : > { %2125 = vmatpush.bf16.msra.mxu3 %v2916_v39  ;;  %v3348_v39 = vor.u32 %v3710_v30, %v3347_v29  ;;  %v3203_v45 = vld [vmem:[%s4157_s6 + $0x5c8] sm:$0xf]  ;;  %v3476_v46 = vor.u32 %v3742_v34, %v3475_v33  ;;  %v3674_v47 = vld [vmem:[%s4157_s6 + $0x5d4] sm:$0xf0] }
  0xbe   : > { %2087 = vmatpush.bf16.msra.mxu0 %v2516_v48  ;;  %v3331_v48 = vld [vmem:[%s4157_s6 + $0x6c8] sm:$0xf]  ;;  %v3738_v51 = vld [vmem:[%s4157_s6 + $0x7d4] sm:$0xf0]  ;;  %v3204_v53 = vor.u32 %v3674_v47, %v3203_v45 }
  0xbf   : > { %v3059_v55 = vld [vmem:[%s4157_s6 + $0x4a8] sm:$0xf]  ;;  %v3638_v56 = vld [vmem:[%s4157_s6 + $0x4b4] sm:$0xf0] }
  0xc0   : > { %2100 = vmatpush.bf16.msra.mxu1 %v2644_v49  ;;  %2113 = vmatpush.bf16.msra.mxu2 %v2772_v50  ;;  %v3706_v49 = vld [vmem:[%s4157_s6 + $0x6d4] sm:$0xf0]  ;;  %v3459_v50 = vld [vmem:[%s4157_s6 + $0x7c8] sm:$0xf]  ;;  %v3060_v0 = vor.u32 %v3638_v56, %v3059_v55 }
  0xc1   : > { %2126 = vmatpush.bf16.msra.mxu3 %v2900_v54  ;;  %v3332_v54 = vor.u32 %v3706_v49, %v3331_v48  ;;  %v3187_v57 = vld [vmem:[%s4157_s6 + $0x5a8] sm:$0xf]  ;;  %v3460_v58 = vor.u32 %v3738_v51, %v3459_v50  ;;  %v3670_v59 = vld [vmem:[%s4157_s6 + $0x5b4] sm:$0xf0] }
  0xc2   : > { %2088 = vmatpush.bf16.msra.mxu0 %v2500_v60  ;;  %v3315_v60 = vld [vmem:[%s4157_s6 + $0x6a8] sm:$0xf]  ;;  %v3734_v63 = vld [vmem:[%s4157_s6 + $0x7b4] sm:$0xf0]  ;;  %v3188_v1 = vor.u32 %v3670_v59, %v3187_v57 }
  0xc3   : > { %v3043_v3 = vld [vmem:[%s4157_s6 + $0x488] sm:$0xf]  ;;  %v3634_v5 = vld [vmem:[%s4157_s6 + $0x494] sm:$0xf0] }
  0xc4   : > { %2101 = vmatpush.bf16.msra.mxu1 %v2628_v61  ;;  %2114 = vmatpush.bf16.msra.mxu2 %v2756_v62  ;;  %v3702_v61 = vld [vmem:[%s4157_s6 + $0x6b4] sm:$0xf0]  ;;  %v3443_v62 = vld [vmem:[%s4157_s6 + $0x7a8] sm:$0xf] }
  0xc5   : > { %2127 = vmatpush.bf16.msra.mxu3 %v2884_v2  ;;  %v3316_v2 = vor.u32 %v3702_v61, %v3315_v60  ;;  %v3171_v7 = vld [vmem:[%s4157_s6 + $0x588] sm:$0xf]  ;;  %v3444_v8 = vor.u32 %v3734_v63, %v3443_v62  ;;  %v3666_v9 = vld [vmem:[%s4157_s6 + $0x594] sm:$0xf0] }
  0xc6   : > { %2089 = vmatpush.bf16.msra.mxu0 %v2484_v10  ;;  %v3299_v10 = vld [vmem:[%s4157_s6 + $0x688] sm:$0xf]  ;;  %v3698_v11 = vld [vmem:[%s4157_s6 + $0x694] sm:$0xf0]  ;;  %v3172_v15 = vor.u32 %v3666_v9, %v3171_v7 }
  0xc7   : > { %v3427_v12 = vld [vmem:[%s4157_s6 + $0x788] sm:$0xf]  ;;  %v3300_v16 = vor.u32 %v3698_v11, %v3299_v10  ;;  %v3662_v23 = vld [vmem:[%s4157_s6 + $0x574] sm:$0xf0]  ;;  %v3516_v10 = vld [vmem:[%s4157_s6 + $0xec] sm:$0xf] }
  0xc8   : > { %2102 = vmatpush.bf16.msra.mxu1 %v2612_v13  ;;  %2115 = vmatpush.bf16.msra.mxu2 %v2740_v14  ;;  %v3730_v13 = vld [vmem:[%s4157_s6 + $0x794] sm:$0xf0]  ;;  %v3044_v14 = vor.u32 %v3634_v5, %v3043_v3  ;;  %v3027_v17 = vld [vmem:[%s4157_s6 + $0x468] sm:$0xf]  ;;  %v2581_v11 = vld [vmem:[%s4157_s6 + $0xf8] sm:$0xf0] }
  0xc9   : > { %2128 = vmatpush.bf16.msra.mxu3 %v2868_v18  ;;  %v3630_v18 = vld [vmem:[%s4157_s6 + $0x474] sm:$0xf0]  ;;  %v3155_v19 = vld [vmem:[%s4157_s6 + $0x568] sm:$0xf]  ;;  %v3428_v22 = vor.u32 %v3730_v13, %v3427_v12  ;;  %v3548_v12 = vld [vmem:[%s4157_s6 + $0x1ec] sm:$0xf] }
  0xca   : > { %2090 = vmatpush.bf16.msra.mxu0 %v2468_v27  ;;  %v3283_v24 = vld [vmem:[%s4157_s6 + $0x668] sm:$0xf]  ;;  %v3694_v25 = vld [vmem:[%s4157_s6 + $0x674] sm:$0xf0]  ;;  %v3028_v28 = vor.u32 %v3630_v18, %v3027_v17  ;;  %v3156_v29 = vor.u32 %v3662_v23, %v3155_v19  ;;  %v2837_v17 = vld [vmem:[%s4157_s6 + $0x2f8] sm:$0xf0] }
  0xcb   : > { %v3411_v26 = vld [vmem:[%s4157_s6 + $0x768] sm:$0xf]  ;;  %v3726_v27 = vld [vmem:[%s4157_s6 + $0x774] sm:$0xf0]  ;;  %v3284_v30 = vor.u32 %v3694_v25, %v3283_v24  ;;  %v3612_v23 = vld [vmem:[%s4157_s6 + $0x3ec] sm:$0xf] }
  0xcc   : > { %2103 = vmatpush.bf16.msra.mxu1 %v2596_v31  ;;  %2116 = vmatpush.bf16.msra.mxu2 %v2724_v32  ;;  %v3011_v31 = vld [vmem:[%s4157_s6 + $0x448] sm:$0xf]  ;;  %v3626_v32 = vld [vmem:[%s4157_s6 + $0x454] sm:$0xf0]  ;;  %v3412_v34 = vor.u32 %v3726_v27, %v3411_v26  ;;  %v2965_v24 = vld [vmem:[%s4157_s6 + $0x3f8] sm:$0xf0]  ;;  %v2584_v27 = vor.u32 %v3516_v10, %v2581_v11 }
  0xcd   : > { %2129 = vmatpush.bf16.msra.mxu3 %v2852_v35  ;;  %2091 = vmatmul.bf16.vlgmr.msra.gmra.mxu0 %v4264_v20  ;;  %v3139_v33 = vld [vmem:[%s4157_s6 + $0x548] sm:$0xf]  ;;  %v3658_v35 = vld [vmem:[%s4157_s6 + $0x554] sm:$0xf0]  ;;  %v3012_v45 = vor.u32 %v3626_v32, %v3011_v31  ;;  %v3512_v32 = vld [vmem:[%s4157_s6 + $0xcc] sm:$0xf] }
  0xce   : > { %2135 = vmatpush.bf16.msrb.mxu0 %v3092_v36  ;;  %v3267_v36 = vld [vmem:[%s4157_s6 + $0x648] sm:$0xf]  ;;  %v3722_v40 = vld [vmem:[%s4157_s6 + $0x754] sm:$0xf0]  ;;  %v3140_v47 = vor.u32 %v3658_v35, %v3139_v33  ;;  %v2565_v33 = vld [vmem:[%s4157_s6 + $0xd8] sm:$0xf0]  ;;  %v2968_v35 = vor.u32 %v3612_v23, %v2965_v24 }
  0xcf   : > { %2117 = vmatmul.bf16.vlgmr.msra.gmra.mxu2 %v4251_v4  ;;  %2104 = vmatmul.bf16.vlgmr.msra.gmra.mxu1 %v4267_v21  ;;  %v2995_v49 = vld [vmem:[%s4157_s6 + $0x428] sm:$0xf]  ;;  %v3622_v50 = vld [vmem:[%s4157_s6 + $0x434] sm:$0xf0]  ;;  %v2773_v23 = vld [vmem:[%s4157_s6 + $0x278] sm:$0xf0] }
  0xd0   : > { %2148 = vmatpush.bf16.msrb.mxu1 %v3220_v37  ;;  %2161 = vmatpush.bf16.msrb.mxu2 %v3348_v39  ;;  %v3690_v37 = vld [vmem:[%s4157_s6 + $0x654] sm:$0xf0]  ;;  %v3395_v39 = vld [vmem:[%s4157_s6 + $0x748] sm:$0xf]  ;;  %v2996_v60 = vor.u32 %v3622_v50, %v2995_v49  ;;  %v3508_v49 = vld [vmem:[%s4157_s6 + $0xac] sm:$0xf] }
  0xd1   : > { %2174 = vmatpush.bf16.msrb.mxu3 %v3476_v46  ;;  %v3268_v48 = vor.u32 %v3690_v37, %v3267_v36  ;;  %v3123_v51 = vld [vmem:[%s4157_s6 + $0x528] sm:$0xf]  ;;  %v3686_v56 = vld [vmem:[%s4157_s6 + $0x634] sm:$0xf0]  ;;  %v2693_v36 = vld [vmem:[%s4157_s6 + $0x1d8] sm:$0xf0] }
  0xd2   : > { %2130 = vmatmul.bf16.vlgmr.msra.gmra.mxu3 %v4253_v6  ;;  %2136 = vmatpush.bf16.msrb.mxu0 %v3076_v52  ;;  %v4570_v52 = vpop.f32.mrf.mxu2  ;;  %v3251_v55 = vld [vmem:[%s4157_s6 + $0x628] sm:$0xf]  ;;  %v4575_v57 = vpop.f32.mrf.mxu3  ;;  %v3718_v59 = vld [vmem:[%s4157_s6 + $0x734] sm:$0xf0]  ;;  %v3576_v37 = vld [vmem:[%s4157_s6 + $0x2cc] sm:$0xf] }
  0xd3   : > { %v2979_v61 = vld [vmem:[%s4157_s6 + $0x408] sm:$0xf]  ;;  %v3618_v62 = vld [vmem:[%s4157_s6 + $0x414] sm:$0xf0]  ;;  %v2549_v50 = vld [vmem:[%s4157_s6 + $0xb8] sm:$0xf0] }
  0xd4   : > { %2149 = vmatpush.bf16.msrb.mxu1 %v3204_v53  ;;  %2162 = vmatpush.bf16.msrb.mxu2 %v3332_v54  ;;  %v3396_v53 = vor.u32 %v3722_v40, %v3395_v39  ;;  %v3654_v54 = vld [vmem:[%s4157_s6 + $0x534] sm:$0xf0]  ;;  %v3235_v3 = vld [vmem:[%s4157_s6 + $0x608] sm:$0xf]  ;;  %v2821_v39 = vld [vmem:[%s4157_s6 + $0x2d8] sm:$0xf0] }
  0xd5   : > { %2175 = vmatpush.bf16.msrb.mxu3 %v3460_v58  ;;  %v3379_v58 = vld [vmem:[%s4157_s6 + $0x728] sm:$0xf]  ;;  %v3124_v63 = vor.u32 %v3654_v54, %v3123_v51  ;;  %v3682_v7 = vld [vmem:[%s4157_s6 + $0x614] sm:$0xf0]  ;;  %v3608_v40 = vld [vmem:[%s4157_s6 + $0x3cc] sm:$0xf] }
  0xd6   : > { %2137 = vmatpush.bf16.msrb.mxu0 %v3060_v0  ;;  %v3252_v0 = vor.u32 %v3686_v56, %v3251_v55  ;;  %v3380_v5 = vor.u32 %v3718_v59, %v3379_v58  ;;  %v3714_v9 = vld [vmem:[%s4157_s6 + $0x714] sm:$0xf0]  ;;  %v3540_v51 = vld [vmem:[%s4157_s6 + $0x1ac] sm:$0xf]  ;;  %v2677_v54 = vld [vmem:[%s4157_s6 + $0x1b8] sm:$0xf0]  ;;  %v2552_v59 = vor.u32 %v3508_v49, %v2549_v50 }
  0xd7   : > { %v3572_v55 = vld [vmem:[%s4157_s6 + $0x2ac] sm:$0xf]  ;;  %v2805_v56 = vld [vmem:[%s4157_s6 + $0x2b8] sm:$0xf0] }
  0xd8   : > { %2150 = vmatpush.bf16.msrb.mxu1 %v3188_v1  ;;  %2163 = vmatpush.bf16.msrb.mxu2 %v3316_v2  ;;  %v1884_v43 = vpop.f32.mrf.mxu0  ;;  %v1897_v46 = vpop.f32.mrf.mxu1  ;;  %v3107_v1 = vld [vmem:[%s4157_s6 + $0x508] sm:$0xf]  ;;  %v3650_v2 = vld [vmem:[%s4157_s6 + $0x514] sm:$0xf0]  ;;  %v3604_v58 = vld [vmem:[%s4157_s6 + $0x3ac] sm:$0xf] }
  0xd9   : > { %2176 = vmatpush.bf16.msrb.mxu3 %v3444_v8  ;;  %v3363_v8 = vld [vmem:[%s4157_s6 + $0x708] sm:$0xf]  ;;  %v3108_v19 = vor.u32 %v3650_v2, %v3107_v1  ;;  %v1898_v31 = vadd.f32 %v1897_v46, %v1884_v43  ;;  %v2568_v43 = vor.u32 %v3512_v32, %v2565_v33  ;;  %v3536_v1 = vld [vmem:[%s4157_s6 + $0x18c] sm:$0xf]  ;;  %v2501_v32 = vld [vmem:[%s4157_s6 + $0x58] sm:$0xf0] }
  0xda   : > { %2138 = vmatpush.bf16.msrb.mxu0 %v3044_v14  ;;  %v2980_v14 = vor.u32 %v3618_v62, %v2979_v61  ;;  %v1912_v25 = vpop.f32.mrf.mxu2  ;;  %v3364_v26 = vor.u32 %v3714_v9, %v3363_v8  ;;  %v2680_v61 = vor.u32 %v3540_v51, %v2677_v54  ;;  %v2808_v62 = vor.u32 %v3572_v55, %v2805_v56  ;;  %v3600_v8 = vld [vmem:[%s4157_s6 + $0x38c] sm:$0xf]  ;;  %v2917_v9 = vld [vmem:[%s4157_s6 + $0x398] sm:$0xf0] }
  0xdb   : > { %v3596_v24 = vld [vmem:[%s4157_s6 + $0x36c] sm:$0xf]  ;;  %v2901_v25 = vld [vmem:[%s4157_s6 + $0x378] sm:$0xf0] }
  0xdc   : > { %2151 = vmatpush.bf16.msrb.mxu1 %v3172_v15  ;;  %2164 = vmatpush.bf16.msrb.mxu2 %v3300_v16  ;;  %v2709_v15 = vld [vmem:[%s4157_s6 + $0x1f8] sm:$0xf0]  ;;  %v3580_v16 = vld [vmem:[%s4157_s6 + $0x2ec] sm:$0xf] }
  0xdd   : > { %2177 = vmatpush.bf16.msrb.mxu3 %v3428_v22  ;;  %v3236_v22 = vor.u32 %v3682_v7, %v3235_v3  ;;  %v2661_v3 = vld [vmem:[%s4157_s6 + $0x198] sm:$0xf0]  ;;  %v3528_v33 = vld [vmem:[%s4157_s6 + $0x14c] sm:$0xf] }
  0xde   : > { %2139 = vmatpush.bf16.msrb.mxu0 %v3028_v28  ;;  %v1925_v28 = vpop.f32.mrf.mxu3  ;;  %v2789_v7 = vld [vmem:[%s4157_s6 + $0x298] sm:$0xf0]  ;;  %v2664_v11 = vor.u32 %v3536_v1, %v2661_v3  ;;  %v3492_v54 = vld [vmem:[%s4157_s6 + $0x2c] sm:$0xf] }
  0xdf   : > { %v2485_v55 = vld [vmem:[%s4157_s6 + $0x38] sm:$0xf0]  ;;  %v3524_v56 = vld [vmem:[%s4157_s6 + $0x12c] sm:$0xf] }
  0xe0   : > { %2152 = vmatpush.bf16.msrb.mxu1 %v3156_v29  ;;  %2165 = vmatpush.bf16.msrb.mxu2 %v3284_v30  ;;  %v1886_v13 = vpop.f32.mrf.mxu0  ;;  %v1899_v18 = vpop.f32.mrf.mxu1  ;;  %v2712_v29 = vor.u32 %v3548_v12, %v2709_v15  ;;  %v2840_v30 = vor.u32 %v3580_v16, %v2837_v17  ;;  %v3532_v15 = vld [vmem:[%s4157_s6 + $0x16c] sm:$0xf]  ;;  %v2488_v1 = vor.u32 %v3492_v54, %v2485_v55  ;;  %v2469_v3 = vld [vmem:[%s4157_s6 + $0x18] sm:$0xf0] }
  0xe1   : > { %2178 = vmatpush.bf16.msrb.mxu3 %v3412_v34  ;;  %v3544_v34 = vld [vmem:[%s4157_s6 + $0x1cc] sm:$0xf]  ;;  %v2920_v18 = vor.u32 %v3600_v8, %v2917_v9  ;;  %v2597_v9 = vld [vmem:[%s4157_s6 + $0x118] sm:$0xf0] }
  0xe2   : > { %2140 = vmatpush.bf16.msrb.mxu0 %v3012_v45  ;;  %v2949_v45 = vld [vmem:[%s4157_s6 + $0x3d8] sm:$0xf0]  ;;  %v2696_v46 = vor.u32 %v3544_v34, %v2693_v36  ;;  %v3500_v13 = vld [vmem:[%s4157_s6 + $0x6c] sm:$0xf]  ;;  %v2904_v36 = vor.u32 %v3596_v24, %v2901_v25 }
  0xe3   : > { %v2629_v34 = vld [vmem:[%s4157_s6 + $0x158] sm:$0xf0]  ;;  %v3520_v8 = vld [vmem:[%s4157_s6 + $0x10c] sm:$0xf] }
  0xe4   : > { %2153 = vmatpush.bf16.msrb.mxu1 %v3140_v47  ;;  %2166 = vmatpush.bf16.msrb.mxu2 %v3268_v48  ;;  %v2824_v47 = vor.u32 %v3576_v37, %v2821_v39  ;;  %v1911_v48 = vadd.f32 %v4570_v52, %v1898_v31  ;;  %v2933_v52 = vld [vmem:[%s4157_s6 + $0x3b8] sm:$0xf0]  ;;  %v3560_v37 = vld [vmem:[%s4157_s6 + $0x24c] sm:$0xf]  ;;  %v2632_v51 = vor.u32 %v3528_v33, %v2629_v34 }
  0xe5   : > { %2179 = vmatpush.bf16.msrb.mxu3 %v3396_v53  ;;  %v2952_v53 = vor.u32 %v3608_v40, %v2949_v45  ;;  %v2936_v2 = vor.u32 %v3604_v58, %v2933_v52  ;;  %v2757_v39 = vld [vmem:[%s4157_s6 + $0x258] sm:$0xf0]  ;;  %v2600_v25 = vor.u32 %v3520_v8, %v2597_v9  ;;  %v3640_v34 = vld [vmem:[%s4157_s6 + $0x4cc] sm:$0xf] }
  0xe6   : > { %2141 = vmatpush.bf16.msrb.mxu0 %v2996_v60  ;;  %v1924_v60 = vadd.f32 %v4575_v57, %v1911_v48  ;;  %v3349_v24 = vld [vmem:[%s4157_s6 + $0x6f8] sm:$0xf0] }
  0xe7   : > { %v3189_v55 = vld [vmem:[%s4157_s6 + $0x5b8] sm:$0xf0] }
  0xe8   : > { %2154 = vmatpush.bf16.msrb.mxu1 %v3124_v63  ;;  %2167 = vmatpush.bf16.msrb.mxu2 %v3252_v0  ;;  %v3504_v63 = vld [vmem:[%s4157_s6 + $0x8c] sm:$0xf]  ;;  %v2533_v0 = vld [vmem:[%s4157_s6 + $0x98] sm:$0xf0] }
  0xe9   : > { %2180 = vmatpush.bf16.msrb.mxu3 %v3380_v5  ;;  %v3568_v5 = vld [vmem:[%s4157_s6 + $0x28c] sm:$0xf]  ;;  %v2536_v57 = vor.u32 %v3504_v63, %v2533_v0  ;;  %v2869_v0 = vld [vmem:[%s4157_s6 + $0x338] sm:$0xf0] }
  0xea   : > { %2142 = vmatpush.bf16.msrb.mxu0 %v2980_v14  ;;  %v2792_v12 = vor.u32 %v3568_v5, %v2789_v7  ;;  %v2517_v14 = vld [vmem:[%s4157_s6 + $0x78] sm:$0xf0]  ;;  %v3588_v63 = vld [vmem:[%s4157_s6 + $0x32c] sm:$0xf] }
  0xeb   : > { %v2520_v28 = vor.u32 %v3500_v13, %v2517_v14  ;;  %v3584_v13 = vld [vmem:[%s4157_s6 + $0x30c] sm:$0xf]  ;;  %v2853_v14 = vld [vmem:[%s4157_s6 + $0x318] sm:$0xf0] }
  0xec   : > { %2155 = vmatpush.bf16.msrb.mxu1 %v3108_v19  ;;  %2168 = vmatpush.bf16.msrb.mxu2 %v3236_v22  ;;  %v1936_v10 = vpop.f32.mrf.mxu0  ;;  %v2645_v19 = vld [vmem:[%s4157_s6 + $0x178] sm:$0xf0]  ;;  %v3564_v22 = vld [vmem:[%s4157_s6 + $0x26c] sm:$0xf] }
  0xed   : > { %2181 = vmatpush.bf16.msrb.mxu3 %v3364_v26  ;;  %2143 = vmatmul.bf16.vlgmr.msrb.gmra.mxu0 %v4321_v41  ;;  %v1937_v16 = vadd.f32 %v1936_v10, %v1924_v60  ;;  %v2776_v31 = vor.u32 %v3564_v22, %v2773_v23  ;;  %v2613_v60 = vld [vmem:[%s4157_s6 + $0x138] sm:$0xf0]  ;;  %v3708_v23 = vld [vmem:[%s4157_s6 + $0x6ec] sm:$0xf] }
  0xee   : > { %2187 = vmatpush.bf16.msra.mxu0 %v2584_v27  ;;  %v1949_v17 = vpop.f32.mrf.mxu1  ;;  %v4636_v27 = vld [vmem:[%s251_s11] sm:$0xf]  ;;  %v2616_v5 = vor.u32 %v3524_v56, %v2613_v60  ;;  %v3221_v22 = vld [vmem:[%s4157_s6 + $0x5f8] sm:$0xf0]  ;;  %v3352_v33 = vor.u32 %v3708_v23, %v3349_v24  ;;  %v3700_v56 = vld [vmem:[%s4157_s6 + $0x6ac] sm:$0xf] }
  0xef   : > { %2169 = vmatmul.bf16.vlgmr.msrb.gmra.mxu2 %v4317_v38  ;;  %2156 = vmatmul.bf16.vlgmr.msrb.gmra.mxu1 %v4325_v44  ;;  %v1950_v26 = vadd.f32 %v1949_v17, %v1937_v16  ;;  %v291_v45 = vperm.slane %v4636_v27, 0  ;;  %v3644_v16 = vld [vmem:[%s4157_s6 + $0x4ec] sm:$0xf]  ;;  %v3093_v17 = vld [vmem:[%s4157_s6 + $0x4f8] sm:$0xf0] }
  0xf0   : > { %2200 = vmatpush.bf16.msra.mxu1 %v2712_v29  ;;  %2213 = vmatpush.bf16.msra.mxu2 %v2840_v30  ;;  %v3496_v29 = vld [vmem:[%s4157_s6 + $0x4c] sm:$0xf]  ;;  %v2648_v30 = vor.u32 %v3532_v15, %v2645_v19 }
  0xf1   : > { %2226 = vmatpush.bf16.msra.mxu3 %v2968_v35  ;;  %v2504_v48 = vor.u32 %v3496_v29, %v2501_v32  ;;  %v3477_v29 = vld [vmem:[%s4157_s6 + $0x7f8] sm:$0xf0]  ;;  %v3624_v24 = vld [vmem:[%s4157_s6 + $0x44c] sm:$0xf] }
  0xf2   : > { %2182 = vmatmul.bf16.vlgmr.msrb.gmra.mxu3 %v4323_v42  ;;  %2188 = vmatpush.bf16.msra.mxu0 %v2568_v43  ;;  %v1962_v35 = vpop.f32.mrf.mxu2 }
  0xf3   : > { %v1963_v40 = vadd.f32 %v1962_v35, %v1950_v26  ;;  %v3077_v35 = vld [vmem:[%s4157_s6 + $0x4d8] sm:$0xf0] }
  0xf4   : > { %2201 = vmatpush.bf16.msra.mxu1 %v2696_v46  ;;  %2214 = vmatpush.bf16.msra.mxu2 %v2824_v47  ;;  %v3592_v46 = vld [vmem:[%s4157_s6 + $0x34c] sm:$0xf]  ;;  %v2885_v47 = vld [vmem:[%s4157_s6 + $0x358] sm:$0xf0]  ;;  %v1938_v50 = vpop.f32.mrf.mxu0 }
  0xf5   : > { %2227 = vmatpush.bf16.msra.mxu3 %v2952_v53  ;;  %v1975_v43 = vpop.f32.mrf.mxu3  ;;  %v2760_v53 = vor.u32 %v3560_v37, %v2757_v39  ;;  %v2888_v52 = vor.u32 %v3592_v46, %v2885_v47  ;;  %v3205_v39 = vld [vmem:[%s4157_s6 + $0x5d8] sm:$0xf0]  ;;  %v3080_v47 = vor.u32 %v3640_v34, %v3077_v35  ;;  %v3636_v50 = vld [vmem:[%s4157_s6 + $0x4ac] sm:$0xf] }
  0xf6   : > { %2189 = vmatpush.bf16.msra.mxu0 %v2552_v59  ;;  %v1976_v49 = vadd.f32 %v1975_v43, %v1963_v40  ;;  %v1951_v58 = vpop.f32.mrf.mxu1  ;;  %v3704_v40 = vld [vmem:[%s4157_s6 + $0x6cc] sm:$0xf]  ;;  %v3461_v46 = vld [vmem:[%s4157_s6 + $0x7d8] sm:$0xf0] }
  0xf7   : > { %v3736_v43 = vld [vmem:[%s4157_s6 + $0x7cc] sm:$0xf]  ;;  %v3317_v58 = vld [vmem:[%s4157_s6 + $0x6b8] sm:$0xf0] }
  0xf8   : > { %2202 = vmatpush.bf16.msra.mxu1 %v2680_v61  ;;  %2215 = vmatpush.bf16.msra.mxu2 %v2808_v62  ;;  %v2291_v59 = vadd.f32 %v1976_v49, %v291_v45  ;;  %v3556_v61 = vld [vmem:[%s4157_s6 + $0x22c] sm:$0xf]  ;;  %v2741_v62 = vld [vmem:[%s4157_s6 + $0x238] sm:$0xf0]  ;;  %v3464_v54 = vor.u32 %v3736_v43, %v3461_v46 }
  0xf9   : > { %2228 = vmatpush.bf16.msra.mxu3 %v2936_v2  ;;  %v3488_v2 = vld [vmem:[%s4157_s6 + $0xc] sm:$0xf]  ;;  %v2744_v7 = vor.u32 %v3556_v61, %v2741_v62  ;;  %v3333_v45 = vld [vmem:[%s4157_s6 + $0x6d8] sm:$0xf0]  ;;  %v3320_v61 = vor.u32 %v3700_v56, %v3317_v58 }
  0xfa   : > { %2190 = vmatpush.bf16.msra.mxu0 %v2536_v57  ;;  %2295 = vst [vmem:[%s4658_s28] sm:$0xff] %v2291_v59  ;;  %v3552_v57 = vld [vmem:[%s4157_s6 + $0x20c] sm:$0xf]  ;;  %v1964_v10 = vpop.f32.mrf.mxu2  ;;  %v2472_v19 = vor.u32 %v3488_v2, %v2469_v3  ;;  %v3336_v49 = vor.u32 %v3704_v40, %v3333_v45  ;;  %v3445_v59 = vld [vmem:[%s4157_s6 + $0x7b8] sm:$0xf0] }
  0xfb   : > { %v3632_v62 = vld [vmem:[%s4157_s6 + $0x48c] sm:$0xf]  ;;  %v3301_v2 = vld [vmem:[%s4157_s6 + $0x698] sm:$0xf0] }
  0xfc   : > { %2203 = vmatpush.bf16.msra.mxu1 %v2664_v11  ;;  %2216 = vmatpush.bf16.msra.mxu2 %v2792_v12  ;;  %v2872_v11 = vor.u32 %v3588_v63, %v2869_v0  ;;  %v2725_v12 = vld [vmem:[%s4157_s6 + $0x218] sm:$0xf0]  ;;  %v3728_v3 = vld [vmem:[%s4157_s6 + $0x78c] sm:$0xf] }
  0xfd   : > { %2229 = vmatpush.bf16.msra.mxu3 %v2920_v18  ;;  %v1977_v15 = vpop.f32.mrf.mxu3  ;;  %v3676_v18 = vld [vmem:[%s4157_s6 + $0x5ec] sm:$0xf]  ;;  %v2728_v26 = vor.u32 %v3552_v57, %v2725_v12  ;;  %v3045_v63 = vld [vmem:[%s4157_s6 + $0x498] sm:$0xf0] }
  0xfe   : > { %2191 = vmatpush.bf16.msra.mxu0 %v2520_v28  ;;  %v3740_v28 = vld [vmem:[%s4157_s6 + $0x7ec] sm:$0xf]  ;;  %v3224_v32 = vor.u32 %v3676_v18, %v3221_v22  ;;  %v3029_v10 = vld [vmem:[%s4157_s6 + $0x478] sm:$0xf0] }
  0xff   : > { %v3480_v37 = vor.u32 %v3740_v28, %v3477_v29  ;;  %v3628_v57 = vld [vmem:[%s4157_s6 + $0x46c] sm:$0xf]  ;;  %v3413_v18 = vld [vmem:[%s4157_s6 + $0x778] sm:$0xf0] }
 0x100   : > { %2204 = vmatpush.bf16.msra.mxu1 %v2648_v30  ;;  %2217 = vmatpush.bf16.msra.mxu2 %v2776_v31  ;;  %v2856_v30 = vor.u32 %v3584_v13, %v2853_v14  ;;  %v3096_v31 = vor.u32 %v3644_v16, %v3093_v17  ;;  %v3157_v14 = vld [vmem:[%s4157_s6 + $0x578] sm:$0xf0]  ;;  %v3692_v15 = vld [vmem:[%s4157_s6 + $0x66c] sm:$0xf] }
 0x101   : > { %2230 = vmatpush.bf16.msra.mxu3 %v2904_v36  ;;  %v3672_v36 = vld [vmem:[%s4157_s6 + $0x5cc] sm:$0xf]  ;;  %v3285_v16 = vld [vmem:[%s4157_s6 + $0x678] sm:$0xf0] }
 0x102   : > { %2192 = vmatpush.bf16.msra.mxu0 %v2504_v48  ;;  %v3208_v48 = vor.u32 %v3672_v36, %v3205_v39  ;;  %v3724_v17 = vld [vmem:[%s4157_s6 + $0x76c] sm:$0xf]  ;;  %v3288_v23 = vor.u32 %v3692_v15, %v3285_v16  ;;  %v3397_v35 = vld [vmem:[%s4157_s6 + $0x758] sm:$0xf0]  ;;  %v292_v15 = vperm.slane %v4636_v27, 1 }
 0x103   : > { %v3416_v29 = vor.u32 %v3724_v17, %v3413_v18  ;;  %v3720_v34 = vld [vmem:[%s4157_s6 + $0x74c] sm:$0xf]  ;;  %v2997_v43 = vld [vmem:[%s4157_s6 + $0x438] sm:$0xf0] }
 0x104   : > { %2205 = vmatpush.bf16.msra.mxu1 %v2632_v51  ;;  %2218 = vmatpush.bf16.msra.mxu2 %v2760_v53  ;;  %v3061_v51 = vld [vmem:[%s4157_s6 + $0x4b8] sm:$0xf0]  ;;  %v3668_v53 = vld [vmem:[%s4157_s6 + $0x5ac] sm:$0xf] }
 0x105   : > { %2231 = vmatpush.bf16.msra.mxu3 %v2888_v52  ;;  %v3732_v52 = vld [vmem:[%s4157_s6 + $0x7ac] sm:$0xf]  ;;  %v3064_v60 = vor.u32 %v3636_v50, %v3061_v51  ;;  %v3253_v51 = vld [vmem:[%s4157_s6 + $0x638] sm:$0xf0] }
 0x106   : > { %2193 = vmatpush.bf16.msra.mxu0 %v2488_v1  ;;  %v3448_v0 = vor.u32 %v3732_v52, %v3445_v59  ;;  %v3173_v1 = vld [vmem:[%s4157_s6 + $0x598] sm:$0xf0]  ;;  %v3620_v45 = vld [vmem:[%s4157_s6 + $0x42c] sm:$0xf] }
 0x107   : > { %v3652_v46 = vld [vmem:[%s4157_s6 + $0x52c] sm:$0xf]  ;;  %v2981_v59 = vld [vmem:[%s4157_s6 + $0x418] sm:$0xf0] }
 0x108   : > { %2206 = vmatpush.bf16.msra.mxu1 %v2616_v5  ;;  %2219 = vmatpush.bf16.msra.mxu2 %v2744_v7  ;;  %v3429_v5 = vld [vmem:[%s4157_s6 + $0x798] sm:$0xf0]  ;;  %v3684_v50 = vld [vmem:[%s4157_s6 + $0x62c] sm:$0xf] }
 0x109   : > { %2232 = vmatpush.bf16.msra.mxu3 %v2872_v11  ;;  %v3660_v11 = vld [vmem:[%s4157_s6 + $0x56c] sm:$0xf]  ;;  %v3432_v13 = vor.u32 %v3728_v3, %v3429_v5  ;;  %v3256_v58 = vor.u32 %v3684_v50, %v3253_v51 }
 0x10a   : > { %2194 = vmatpush.bf16.msra.mxu0 %v2472_v19  ;;  %v4705_v7 = vpop.f32.mrf.mxu0  ;;  %v3032_v19 = vor.u32 %v3628_v57, %v3029_v10  ;;  %v3160_v22 = vor.u32 %v3660_v11, %v3157_v14  ;;  %v3616_v52 = vld [vmem:[%s4157_s6 + $0x40c] sm:$0xf] }
 0x10c   : > { %2207 = vmatpush.bf16.msra.mxu1 %v2600_v25  ;;  %2220 = vmatpush.bf16.msra.mxu2 %v2728_v26  ;;  %v4710_v12 = vpop.f32.mrf.mxu1  ;;  %v3013_v25 = vld [vmem:[%s4157_s6 + $0x458] sm:$0xf0]  ;;  %v3656_v26 = vld [vmem:[%s4157_s6 + $0x54c] sm:$0xf] }
 0x10d   : > { %2233 = vmatpush.bf16.msra.mxu3 %v2856_v30  ;;  %2195 = vmatmul.bf16.vlgmr.msra.gmra.mxu0 %v4264_v20  ;;  %v3696_v20 = vld [vmem:[%s4157_s6 + $0x68c] sm:$0xf]  ;;  %v3141_v30 = vld [vmem:[%s4157_s6 + $0x558] sm:$0xf0]  ;;  %v3016_v36 = vor.u32 %v3624_v24, %v3013_v25 }
 0x10e   : > { %2239 = vmatpush.bf16.msrb.mxu0 %v3096_v31  ;;  %v3304_v9 = vor.u32 %v3696_v20, %v3301_v2  ;;  %v3688_v31 = vld [vmem:[%s4157_s6 + $0x64c] sm:$0xf]  ;;  %v3144_v39 = vor.u32 %v3656_v26, %v3141_v30  ;;  %v3365_v20 = vld [vmem:[%s4157_s6 + $0x718] sm:$0xf0]  ;;  %v2984_v2 = vor.u32 %v3616_v52, %v2981_v59 }
 0x10f   : > { %2221 = vmatmul.bf16.vlgmr.msra.gmra.mxu2 %v4251_v4  ;;  %2208 = vmatmul.bf16.vlgmr.msra.gmra.mxu1 %v4267_v21  ;;  %v3192_v4 = vor.u32 %v3668_v53, %v3189_v55  ;;  %v3048_v21 = vor.u32 %v3632_v62, %v3045_v63  ;;  %v3716_v53 = vld [vmem:[%s4157_s6 + $0x72c] sm:$0xf]  ;;  %v3000_v55 = vor.u32 %v3620_v45, %v2997_v43  ;;  %v3109_v62 = vld [vmem:[%s4157_s6 + $0x518] sm:$0xf0] }
 0x110   : > { %2252 = vmatpush.bf16.msrb.mxu1 %v3224_v32  ;;  %2265 = vmatpush.bf16.msrb.mxu2 %v3352_v33  ;;  %v3269_v32 = vld [vmem:[%s4157_s6 + $0x658] sm:$0xf0]  ;;  %v3680_v63 = vld [vmem:[%s4157_s6 + $0x60c] sm:$0xf] }
 0x111   : > { %2278 = vmatpush.bf16.msrb.mxu3 %v3480_v37  ;;  %v3272_v40 = vor.u32 %v3688_v31, %v3269_v32 }
 0x112   : > { %2234 = vmatmul.bf16.vlgmr.msra.gmra.mxu3 %v4253_v6  ;;  %2240 = vmatpush.bf16.msrb.mxu0 %v3080_v47  ;;  %v3664_v6 = vld [vmem:[%s4157_s6 + $0x58c] sm:$0xf]  ;;  %v2014_v28 = vpop.f32.mrf.mxu2  ;;  %v1990_v37 = vpop.f32.mrf.mxu0 }
 0x113   : > { %v3176_v8 = vor.u32 %v3664_v6, %v3173_v1  ;;  %v3237_v6 = vld [vmem:[%s4157_s6 + $0x618] sm:$0xf0]  ;;  %v3712_v1 = vld [vmem:[%s4157_s6 + $0x70c] sm:$0xf] }
 0x114   : > { %2253 = vmatpush.bf16.msrb.mxu1 %v3208_v48  ;;  %2266 = vmatpush.bf16.msrb.mxu2 %v3336_v49  ;;  %v2003_v47 = vpop.f32.mrf.mxu1  ;;  %v3400_v48 = vor.u32 %v3720_v34, %v3397_v35  ;;  %v3125_v49 = vld [vmem:[%s4157_s6 + $0x538] sm:$0xf0]  ;;  %v3240_v5 = vor.u32 %v3680_v63, %v3237_v6 }
 0x115   : > { %2279 = vmatpush.bf16.msrb.mxu3 %v3464_v54  ;;  %v2027_v33 = vpop.f32.mrf.mxu3  ;;  %v3381_v54 = vld [vmem:[%s4157_s6 + $0x738] sm:$0xf0]  ;;  %v3128_v56 = vor.u32 %v3652_v46, %v3125_v49 }
 0x116   : > { %2241 = vmatpush.bf16.msrb.mxu0 %v3064_v60  ;;  %v3648_v60 = vld [vmem:[%s4157_s6 + $0x50c] sm:$0xf] }
 0x117   : > { %v3112_v3 = vor.u32 %v3648_v60, %v3109_v62 }
 0x118   : > { %2254 = vmatpush.bf16.msrb.mxu1 %v3192_v4  ;;  %2267 = vmatpush.bf16.msrb.mxu2 %v3320_v61  ;;  %v3384_v61 = vor.u32 %v3716_v53, %v3381_v54 }
 0x119   : > { %2280 = vmatpush.bf16.msrb.mxu3 %v3448_v0 }
 0x11a   : > { %2242 = vmatpush.bf16.msrb.mxu0 %v3048_v21  ;;  %v2016_v4 = vpop.f32.mrf.mxu2  ;;  %v3368_v21 = vor.u32 %v3712_v1, %v3365_v20 }
 0x11c   : > { %2255 = vmatpush.bf16.msrb.mxu1 %v3176_v8  ;;  %2268 = vmatpush.bf16.msrb.mxu2 %v3304_v9  ;;  %v2002_v8 = vadd.f32 %v4710_v12, %v4705_v7 }
 0x11d   : > { %2281 = vmatpush.bf16.msrb.mxu3 %v3432_v13  ;;  %v2029_v0 = vpop.f32.mrf.mxu3 }
 0x11e   : > { %2243 = vmatpush.bf16.msrb.mxu0 %v3032_v19  ;;  %v2015_v9 = vadd.f32 %v2014_v28, %v2002_v8 }
 0x120   : > { %2256 = vmatpush.bf16.msrb.mxu1 %v3160_v22  ;;  %2269 = vmatpush.bf16.msrb.mxu2 %v3288_v23  ;;  %v2028_v57 = vadd.f32 %v2027_v33, %v2015_v9 }
 0x121   : > { %2282 = vmatpush.bf16.msrb.mxu3 %v3416_v29 }
 0x122   : > { %2244 = vmatpush.bf16.msrb.mxu0 %v3016_v36 }
 0x124   : > { %2257 = vmatpush.bf16.msrb.mxu1 %v3144_v39  ;;  %2270 = vmatpush.bf16.msrb.mxu2 %v3272_v40  ;;  %v293_v40 = vperm.slane %v4636_v27, 2 }
 0x125   : > { %2283 = vmatpush.bf16.msrb.mxu3 %v3400_v48 }
 0x126   : > { %2245 = vmatpush.bf16.msrb.mxu0 %v3000_v55 }
 0x128   : > { %2258 = vmatpush.bf16.msrb.mxu1 %v3128_v56  ;;  %2271 = vmatpush.bf16.msrb.mxu2 %v3256_v58 }
 0x129   : > { %2284 = vmatpush.bf16.msrb.mxu3 %v3384_v61 }
 0x12a   : > { %2246 = vmatpush.bf16.msrb.mxu0 %v2984_v2  ;;  %v2040_v10 = vpop.f32.mrf.mxu0  ;;  %v294_v2 = vperm.slane %v4636_v27, 3 }
 0x12b   : > { %v2041_v11 = vadd.f32 %v2040_v10, %v2028_v57 }
 0x12c   : > { %2259 = vmatpush.bf16.msrb.mxu1 %v3112_v3  ;;  %2272 = vmatpush.bf16.msrb.mxu2 %v3240_v5  ;;  %v2053_v13 = vpop.f32.mrf.mxu1 }
 0x12d   : > { %2285 = vmatpush.bf16.msrb.mxu3 %v3368_v21  ;;  %2247 = vmatmul.bf16.vlgmr.msrb.gmra.mxu0 %v4321_v41  ;;  %v2054_v14 = vadd.f32 %v2053_v13, %v2041_v11 }
 0x12f   : > { %2260 = vmatmul.bf16.vlgmr.msrb.gmra.mxu1 %v4325_v44  ;;  %2273 = vmatmul.bf16.vlgmr.msrb.gmra.mxu2 %v4317_v38 }
 0x130   : > { %2286 = vmatmul.bf16.vlgmr.msrb.gmra.mxu3 %v4323_v42 }
 0x132   : > { %v2066_v7 = vpop.f32.mrf.mxu2  ;;  %v2042_v41 = vpop.f32.mrf.mxu0 }
 0x133   : > { %v2067_v12 = vadd.f32 %v2066_v7, %v2054_v14 }
 0x134   : > { %v2055_v18 = vpop.f32.mrf.mxu1 }
 0x135   : > { %v2079_v16 = vpop.f32.mrf.mxu3 }
 0x136   : > { %v2080_v17 = vadd.f32 %v2079_v16, %v2067_v12 }
 0x138   : > { %v2292_v19 = vadd.f32 %v2080_v17, %v292_v15 }
 0x13a   : > { %2296 = vst [vmem:[%s4658_s28 + $0x8] sm:$0xff] %v2292_v19  ;;  %v2068_v44 = vpop.f32.mrf.mxu2 }
 0x13d   : > { %v2081_v22 = vpop.f32.mrf.mxu3 }
 0x14a   : > { %v2092_v38 = vpop.f32.mrf.mxu0 }
 0x14c   : > { %v2105_v23 = vpop.f32.mrf.mxu1 }
 0x14d   : > { %v2106_v30 = vadd.f32 %v2105_v23, %v2092_v38 }
 0x152   : > { %v2118_v42 = vpop.f32.mrf.mxu2  ;;  %v2094_v25 = vpop.f32.mrf.mxu0 }
 0x153   : > { %v2119_v31 = vadd.f32 %v2118_v42, %v2106_v30 }
 0x154   : > { %v2107_v26 = vpop.f32.mrf.mxu1 }
 0x155   : > { %v2131_v24 = vpop.f32.mrf.mxu3 }
 0x156   : > { %v2132_v32 = vadd.f32 %v2131_v24, %v2119_v31 }
 0x15a   : > { %v2120_v28 = vpop.f32.mrf.mxu2 }
 0x15d   : > { %v2133_v29 = vpop.f32.mrf.mxu3 }
 0x16a   : > { %v2144_v33 = vpop.f32.mrf.mxu0 }
 0x16b   : > { %v2145_v34 = vadd.f32 %v2144_v33, %v2132_v32 }
 0x16c   : > { %v2157_v35 = vpop.f32.mrf.mxu1 }
 0x16d   : > { %v2158_v36 = vadd.f32 %v2157_v35, %v2145_v34 }
 0x172   : > { %v2170_v37 = vpop.f32.mrf.mxu2  ;;  %v2146_v46 = vpop.f32.mrf.mxu0 }
 0x173   : > { %v2171_v39 = vadd.f32 %v2170_v37, %v2158_v36 }
 0x174   : > { %v2159_v47 = vpop.f32.mrf.mxu1 }
 0x175   : > { %v2183_v45 = vpop.f32.mrf.mxu3 }
 0x176   : > { %v2184_v43 = vadd.f32 %v2183_v45, %v2171_v39 }
 0x178   : > { %v2293_v48 = vadd.f32 %v2184_v43, %v293_v40 }
 0x17a   : > { %2297 = vst [vmem:[%s4658_s28 + $0x10] sm:$0xff] %v2293_v48  ;;  %v2172_v49 = vpop.f32.mrf.mxu2 }
 0x17d   : > { %v2185_v50 = vpop.f32.mrf.mxu3 }
 0x18a   : > { %v2196_v51 = vpop.f32.mrf.mxu0 }
 0x18c   : > { %v2209_v53 = vpop.f32.mrf.mxu1 }
 0x18d   : > { %v2210_v60 = vadd.f32 %v2209_v53, %v2196_v51 }
 0x192   : > { %v2222_v54 = vpop.f32.mrf.mxu2  ;;  %v2198_v56 = vpop.f32.mrf.mxu0 }
 0x193   : > { %v2223_v4 = vadd.f32 %v2222_v54, %v2210_v60 }
 0x194   : > { %v2211_v58 = vpop.f32.mrf.mxu1 }
 0x195   : > { %v2235_v55 = vpop.f32.mrf.mxu3 }
 0x196   : > { %v2236_v61 = vadd.f32 %v2235_v55, %v2223_v4 }
 0x19a   : > { %v2224_v52 = vpop.f32.mrf.mxu2 }
 0x19d   : > { %v2237_v59 = vpop.f32.mrf.mxu3 }
 0x1aa   : > { %v2248_v62 = vpop.f32.mrf.mxu0 }
 0x1ab   : > { %v2249_v6 = vadd.f32 %v2248_v62, %v2236_v61 }
 0x1ac   : > { %v2261_v63 = vpop.f32.mrf.mxu1 }
 0x1ad   : > { %v2262_v0 = vadd.f32 %v2261_v63, %v2249_v6 }
 0x1b2   : > { %v2274_v1 = vpop.f32.mrf.mxu2  ;;  %v2250_v5 = vpop.f32.mrf.mxu0 }
 0x1b3   : > { %v2275_v20 = vadd.f32 %v2274_v1, %v2262_v0  ;;  %v2287_v3 = vpop.f32.mrf.mxu3 }
 0x1b4   : > { %v2263_v21 = vpop.f32.mrf.mxu1 }
 0x1b5   : > { %v2288_v8 = vadd.f32 %v2287_v3, %v2275_v20 }
 0x1b7   : > { %v2294_v9 = vadd.f32 %v2288_v8, %v294_v2 }
 0x1b9   : > { %2298 = vst [vmem:[%s4658_s28 + $0x18] sm:$0xff] %v2294_v9 }
 0x1ba   : > { %v2276_v57 = vpop.f32.mrf.mxu2 }
 0x1bb   : > { %3942 = shalt.err (!%p3939_p13)
}
 0x1bc   : > { %3752 = dma.vmem_to_hbm [thread:$0]  (%p4117_p0), %s2316_s10, 512, %s2318_s19, %s2300_s15   ;;  %v2289_v27 = vpop.f32.mrf.mxu3 }
 0x1bd PF: > { %s2329_s29 = sand.u32 1, %s3981_s12   ;;  %p3766_p4 = pnand %p2446_p3, %p4121_p2 }
 0x1be   : > { %s2330_s11 = scalar_lea.sflag [#allocation4], %s2329_s29 }
 0x1bf   : > { %p3767_p5 = pneg %p3766_p4 }
 0x1c1   : > { %3976 = dma.done.wait (%p3767_p5), %s2330_s11, 512  }
 0x1c2   : > { %3978 = vsyncadd (%p3767_p5), %s2330_s11, 4294966784  ;;  %s20_s17 = sadd.s32 1, %s4001_s17   ;;  %s4802_s12 = smov %s3985_s13 }
 0x1c3   : > { %p17_p1 = scmp.ge.s32.totalorder %s20_s17, 4   ;;  %s4803_s13 = smov %s3989_s14 }
 0x1c4   : > { %s4804_s14 = smov %s4079_s25  ;;  %s4805_s15 = smov %s3997_s16 }
 0x1c5   : > { %s4806_s16 = smov %s4808_s18  ;;  %19 = sbr.rel (!%p17_p1) target bundleno = 7 (0x7), region = 98 }
 0x1ca   :  { %2336 = vsyncpa [#allocation3], 1 }
 0x1cb   :  { %2338 = vsyncpa [#allocation3 + $0x1], 1 }
 0x1cc   :  { %2339 = vsyncpa [#allocation6], 1 }
 0x1cd   :  { %2341 = vsyncpa [#allocation6 + $0x1], 1 }
 0x1ce   :  { %2342 = vsyncpa [#allocation4], 1 }
 0x1cf   :  { %2344 = vsyncpa [#allocation4 + $0x1], 1 }

</bundles_post_ra>
